<compile_context>
chip_gen: v7x
topology: tpu7x:2x2x1
jax: 0.10.0
libtpu: 0.0.40
codegen_flags: <defaults>
</compile_context>

<pallas_src>
import functools
import jax
import jax.numpy as jnp
from jax.experimental import pallas as pl
from jax.experimental.pallas import tpu as pltpu


def _round_up(x, m):
    return ((x + m - 1) // m) * m


# ----------------------------------------------------------------------------
# Kernel A: fused 3x ReversibleBlock chain + bilinear_pool 1x1 conv
#   grid over M rows; weights (6+2 matmuls) resident in VMEM across steps.
# ----------------------------------------------------------------------------
def _fused_rev_conv_kernel(x1_ref, x2_ref, wrev_ref, brev_ref,
                           wconv_ref, bconv_ref, o_ref):
    f32, bf16 = jnp.float32, jnp.bfloat16
    x1 = x1_ref[...].astype(f32)
    x2 = x2_ref[...].astype(f32)
    # 3 x ReversibleBlock: y1 = x1 + relu(F(x2)); y2 = x2 + relu(G(y1))
    for k in range(3):
        wf = wrev_ref[2 * k]          # (Ch, Ch) bf16
        bf = brev_ref[2 * k]          # (1, Ch)  f32
        wg = wrev_ref[2 * k + 1]
        bg = brev_ref[2 * k + 1]
        y1 = x1 + jnp.maximum(
            jnp.dot(x2.astype(bf16), wf, preferred_element_type=f32) + bf, 0.0)
        y2 = x2 + jnp.maximum(
            jnp.dot(y1.astype(bf16), wg, preferred_element_type=f32) + bg, 0.0)
        x1, x2 = y1, y2
    # bilinear_pool Conv2d(C, C//2, 1) on concat([x1, x2]) without the concat:
    # conv = x1 @ W[:Ch] + x2 @ W[Ch:] + b
    conv = (jnp.dot(x1.astype(bf16), wconv_ref[0], preferred_element_type=f32)
            + jnp.dot(x2.astype(bf16), wconv_ref[1], preferred_element_type=f32)
            + bconv_ref[...])
    o_ref[...] = conv.astype(o_ref.dtype)


def fused_rev_conv(x1, x2, w_rev, b_rev, w_conv, b_conv, *, tm):
    M_pad, Ch = x1.shape
    grid = (M_pad // tm,)
    flops = 2 * M_pad * Ch * Ch * 8                     # 6 rev matmuls + 2 conv halves
    bytes_acc = (3 * M_pad * Ch + 8 * Ch * Ch) * 2 + 9 * Ch * 4
    return pl.pallas_call(
        _fused_rev_conv_kernel,
        grid=grid,
        out_shape=jax.ShapeDtypeStruct((M_pad, Ch), jnp.bfloat16),
        in_specs=[
            pl.BlockSpec((tm, Ch), lambda i: (i, 0)),        # x1 tile
            pl.BlockSpec((tm, Ch), lambda i: (i, 0)),        # x2 tile
            pl.BlockSpec((6, Ch, Ch), lambda i: (0, 0, 0)),  # rev weights (resident)
            pl.BlockSpec((6, 1, Ch), lambda i: (0, 0, 0)),   # rev biases
            pl.BlockSpec((2, Ch, Ch), lambda i: (0, 0, 0)),  # conv weight halves
            pl.BlockSpec((1, Ch), lambda i: (0, 0)),         # conv bias
        ],
        out_specs=pl.BlockSpec((tm, Ch), lambda i: (i, 0)),
        compiler_params=pltpu.CompilerParams(
            dimension_semantics=("parallel",),
            vmem_limit_bytes=48 * 1024 * 1024,
        ),
        cost_estimate=pl.CostEstimate(
            flops=flops, transcendentals=0, bytes_accessed=bytes_acc),
    )(x1, x2, w_rev, b_rev, w_conv, b_conv)


# ----------------------------------------------------------------------------
# Kernel B: DualAttention + AdaptiveAvgPool(1,1) + embedding(+BN folded)
#           + classifier, fused; grid over batch blocks of Bt images.
# Head N dims are zero-padded to 128 lanes (lane-dense stores), sliced outside.
# ----------------------------------------------------------------------------
def _attn_gap_head_kernel(feat_ref, w1_ref, b1_ref, w2_ref, b2_ref, sw_ref,
                          wemb_ref, bemb_ref, wcls_ref, bcls_ref,
                          emb_ref, logits_ref):
    f32, bf16 = jnp.float32, jnp.bfloat16
    feat = feat_ref[...].astype(f32)                           # (Bt, HW, Ch)
    # channel attention: GAP over spatial -> MLP -> sigmoid (stats in f32)
    ca_in = jnp.mean(feat, axis=1)                             # (Bt, Ch)
    hid = jnp.dot(ca_in.astype(bf16), w1_ref[...],
                  preferred_element_type=f32) + b1_ref[...]
    hid = jnp.maximum(hid, 0.0)
    ca = jax.nn.sigmoid(
        jnp.dot(hid.astype(bf16), w2_ref[...],
                preferred_element_type=f32) + b2_ref[...])     # (Bt, Ch)
    feat_ca = feat * ca[:, None, :]
    # spatial attention from channel mean/max statistics (scalar-weighted)
    sa_mean = jnp.mean(feat_ca, axis=2, keepdims=True)         # (Bt, HW, 1)
    sa_max = jnp.max(feat_ca, axis=2, keepdims=True)
    sa = jax.nn.sigmoid(sa_mean * sw_ref[0] + sa_max * sw_ref[1] + sw_ref[2])
    attended = feat_ca * sa                                    # (Bt, HW, Ch)
    # AdaptiveAvgPool2d((1, 1)) == mean over spatial
    pooled = jnp.mean(attended, axis=1)                        # (Bt, Ch)
    # embedding Linear + folded eval-mode BatchNorm1d, then classifier Linear
    emb = jnp.dot(pooled.astype(bf16), wemb_ref[...],
                  preferred_element_type=f32) + bemb_ref[...]  # (Bt, NP)
    logits = jnp.dot(emb.astype(bf16), wcls_ref[...],
                     preferred_element_type=f32) + bcls_ref[...]
    emb_ref[...] = emb
    logits_ref[...] = logits


def attn_gap_head(feat, w1, b1, w2, b2, sw, w_emb, b_emb, w_cls, b_cls):
    B, HW, Ch = feat.shape
    Ah = w1.shape[1]
    NP = w_emb.shape[1]
    Bt = B if B <= 8 else 8
    assert B % Bt == 0, "batch must be a multiple of the batch tile"
    return pl.pallas_call(
        _attn_gap_head_kernel,
        grid=(B // Bt,),
        out_shape=(jax.ShapeDtypeStruct((B, NP), jnp.float32),
                   jax.ShapeDtypeStruct((B, NP), jnp.float32)),
        in_specs=[
            pl.BlockSpec((Bt, HW, Ch), lambda b: (b, 0, 0)),
            pl.BlockSpec((Ch, Ah), lambda b: (0, 0)),
            pl.BlockSpec((1, Ah), lambda b: (0, 0)),
            pl.BlockSpec((Ah, Ch), lambda b: (0, 0)),
            pl.BlockSpec((1, Ch), lambda b: (0, 0)),
            pl.BlockSpec(memory_space=pltpu.MemorySpace.SMEM),
            pl.BlockSpec((Ch, NP), lambda b: (0, 0)),
            pl.BlockSpec((1, NP), lambda b: (0, 0)),
            pl.BlockSpec((NP, NP), lambda b: (0, 0)),
            pl.BlockSpec((1, NP), lambda b: (0, 0)),
        ],
        out_specs=(pl.BlockSpec((Bt, NP), lambda b: (b, 0)),
                   pl.BlockSpec((Bt, NP), lambda b: (b, 0))),
        compiler_params=pltpu.CompilerParams(dimension_semantics=("parallel",)),
    )(feat, w1, b1, w2, b2, sw, w_emb, b_emb, w_cls, b_cls)


# ----------------------------------------------------------------------------
# Parameter construction (deterministic, synthetic; bf16 matmul weights,
# f32 biases; eval-mode BatchNorm1d folded into the embedding Linear;
# head weights zero-padded to 128 lanes).
# ----------------------------------------------------------------------------
N_PAD = 128


def init_params(key, C=256, embed=32, num_classes=16, attn_reduction=4):
    Ch = C // 2
    Ah = max(Ch // attn_reduction, 8)
    ks = jax.random.split(key, 12)

    def w(k, shape, scale=0.05):
        return jax.random.normal(k, shape, jnp.float32) * scale

    # 3 ReversibleBlocks, stacked as [f0, g0, f1, g1, f2, g2]
    w_rev = jnp.stack([w(ks[i], (Ch, Ch)) for i in range(6)]).astype(jnp.bfloat16)
    b_rev = jnp.zeros((6, 1, Ch), jnp.float32)

    # bilinear_pool Conv2d(C, C//2, 1): weight (C, Ch) split into x1/x2 halves
    w_conv_full = w(ks[6], (C, Ch))
    w_conv = jnp.stack([w_conv_full[:Ch], w_conv_full[Ch:]]).astype(jnp.bfloat16)
    b_conv = jnp.zeros((1, Ch), jnp.float32)

    # DualAttention(C//2) channel-MLP + spatial scalar weights
    w1 = w(ks[7], (Ch, Ah), 0.1).astype(jnp.bfloat16)
    b1 = jnp.zeros((1, Ah), jnp.float32)
    w2 = w(ks[8], (Ah, Ch), 0.1).astype(jnp.bfloat16)
    b2 = jnp.zeros((1, Ch), jnp.float32)
    sw = jnp.array([0.5, 0.5, 0.0], jnp.float32)

    # embedding: Linear(Ch, embed) + BatchNorm1d(embed), eval mode, folded
    w_emb = w(ks[9], (Ch, embed))
    b_emb = jnp.zeros((embed,), jnp.float32)
    gamma = jnp.ones((embed,), jnp.float32)
    beta = jnp.zeros((embed,), jnp.float32)
    run_mean = jnp.zeros((embed,), jnp.float32)
    run_var = jnp.ones((embed,), jnp.float32)
    scale = gamma / jnp.sqrt(run_var + 1e-5)
    w_emb = w_emb * scale[None, :]
    b_emb = (b_emb - run_mean) * scale + beta
    w_emb_p = jnp.zeros((Ch, N_PAD), jnp.float32).at[:, :embed].set(w_emb)
    b_emb_p = jnp.zeros((1, N_PAD), jnp.float32).at[0, :embed].set(b_emb)

    # classifier: Linear(embed, num_classes), lane/row padded to (N_PAD, N_PAD)
    w_cls = w(ks[10], (embed, num_classes))
    b_cls = jnp.zeros((num_classes,), jnp.float32)
    w_cls_p = jnp.zeros((N_PAD, N_PAD), jnp.float32).at[:embed, :num_classes].set(w_cls)
    b_cls_p = jnp.zeros((1, N_PAD), jnp.float32).at[0, :num_classes].set(b_cls)

    return dict(
        w_rev=w_rev, b_rev=b_rev, w_conv=w_conv, b_conv=b_conv,
        w1=w1, b1=b1, w2=w2, b2=b2, sw=sw,
        w_emb=w_emb_p.astype(jnp.bfloat16), b_emb=b_emb_p,
        w_cls=w_cls_p.astype(jnp.bfloat16), b_cls=b_cls_p,
    )


# ----------------------------------------------------------------------------
# Forward (mirrors MADRNet.forward after the resnet backbone)
# ----------------------------------------------------------------------------
def madrnet_forward(x_nchw, params, *, embed=32, num_classes=16):
    B, C, H, W = x_nchw.shape
    Ch = C // 2
    HW = H * W
    M = B * HW

    # NCHW -> (B*HW, C) rows; torch.chunk(x, 2, dim=1) == channel halves
    rows = jnp.transpose(x_nchw, (0, 2, 3, 1)).reshape(M, C)
    x1 = rows[:, :Ch].astype(jnp.bfloat16)
    x2 = rows[:, Ch:].astype(jnp.bfloat16)

    # 8-aligned row tiling (handles HW=196 style shapes by zero-padding rows)
    tm = 256 if M >= 256 else _round_up(M, 8)
    M_pad = _round_up(M, tm)
    if M_pad != M:
        x1 = jnp.pad(x1, ((0, M_pad - M), (0, 0)))
        x2 = jnp.pad(x2, ((0, M_pad - M), (0, 0)))

    # Kernel A: reversible-block chain + bilinear 1x1 conv (fused)
    conv = fused_rev_conv(x1, x2, params["w_rev"], params["b_rev"],
                          params["w_conv"], params["b_conv"], tm=tm)
    feat = conv[:M].reshape(B, HW, Ch)

    # Kernel B: DualAttention + GAP + embedding(+BN) + classifier (fused)
    emb_p, logits_p = attn_gap_head(
        feat, params["w1"], params["b1"], params["w2"], params["b2"],
        params["sw"], params["w_emb"], params["b_emb"],
        params["w_cls"], params["b_cls"])

    return logits_p[:, :num_classes], emb_p[:, :embed]


if __name__ == "__main__":
    key = jax.random.PRNGKey(0)
    kx, kp = jax.random.split(key)

    # Scaled-down stand-in for the resnet50 layer4 output (B, 2048, 14, 14).
    B, C, H, W = 2, 256, 8, 8
    EMBED, NUM_CLASSES = 32, 16

    x = jax.random.normal(kx, (B, C, H, W), jnp.float32)
    params = init_params(kp, C=C, embed=EMBED, num_classes=NUM_CLASSES)

    fwd = jax.jit(functools.partial(
        madrnet_forward, embed=EMBED, num_classes=NUM_CLASSES))
    logits, emb = fwd(x, params)
    jax.block_until_ready((logits, emb))

    assert logits.shape == (B, NUM_CLASSES) and emb.shape == (B, EMBED)
    assert bool(jnp.all(jnp.isfinite(logits))) and bool(jnp.all(jnp.isfinite(emb)))
    print("KERNEL_OK")
</pallas_src>

<mosaic_0001>
module attributes {stable_mosaic.version = 11 : i64} {
  func.func @_fused_rev_conv_kernel(%arg0: i32, %arg1: memref<128x128xbf16, #tpu.memory_space<vmem>>, %arg2: memref<128x128xbf16, #tpu.memory_space<vmem>>, %arg3: memref<6x128x128xbf16, #tpu.memory_space<vmem>>, %arg4: memref<6x1x128xf32, #tpu.memory_space<vmem>>, %arg5: memref<2x128x128xbf16, #tpu.memory_space<vmem>>, %arg6: memref<1x128xf32, #tpu.memory_space<vmem>>, %arg7: memref<128x128xbf16, #tpu.memory_space<vmem>>) attributes {dimension_semantics = [#tpu.dimension_semantics<parallel>], iteration_bounds = array<i64: 1>, scalar_prefetch = 0 : i64, scratch_operands = 0 : i64, tpu.core_type = #tpu.core_type<tc>, window_params = [{transform_indices = @transform_0, window_bounds = array<i64: 128, 128>}, {transform_indices = @transform_1, window_bounds = array<i64: 128, 128>}, {pipeline_mode = #tpu.pipeline_mode<synchronous>, transform_indices = @transform_2, window_bounds = array<i64: 6, 128, 128>}, {pipeline_mode = #tpu.pipeline_mode<synchronous>, transform_indices = @transform_3, window_bounds = array<i64: 6, 1, 128>}, {pipeline_mode = #tpu.pipeline_mode<synchronous>, transform_indices = @transform_4, window_bounds = array<i64: 2, 128, 128>}, {pipeline_mode = #tpu.pipeline_mode<synchronous>, transform_indices = @transform_5, window_bounds = array<i64: 1, 128>}, {transform_indices = @transform_6, window_bounds = array<i64: 128, 128>}]} {
    %c0 = arith.constant 0 : index
    %c0_0 = arith.constant 0 : index
    %0 = vector.load %arg1[%c0, %c0_0] : memref<128x128xbf16, #tpu.memory_space<vmem>>, vector<128x128xbf16>
    %1 = arith.extf %0 : vector<128x128xbf16> to vector<128x128xf32>
    %c0_1 = arith.constant 0 : index
    %c0_2 = arith.constant 0 : index
    %2 = vector.load %arg2[%c0_1, %c0_2] : memref<128x128xbf16, #tpu.memory_space<vmem>>, vector<128x128xbf16>
    %3 = arith.extf %2 : vector<128x128xbf16> to vector<128x128xf32>
    %c0_3 = arith.constant 0 : index
    %c0_4 = arith.constant 0 : index
    %c0_5 = arith.constant 0 : index
    %4 = vector.load %arg3[%c0_3, %c0_4, %c0_5] : memref<6x128x128xbf16, #tpu.memory_space<vmem>>, vector<1x128x128xbf16>
    %5 = vector.shape_cast %4 : vector<1x128x128xbf16> to vector<128x128xbf16>
    %c0_6 = arith.constant 0 : index
    %c0_7 = arith.constant 0 : index
    %c0_8 = arith.constant 0 : index
    %6 = vector.load %arg4[%c0_6, %c0_7, %c0_8] : memref<6x1x128xf32, #tpu.memory_space<vmem>>, vector<1x1x128xf32>
    %7 = vector.shape_cast %6 : vector<1x1x128xf32> to vector<1x128xf32>
    %c1 = arith.constant 1 : index
    %c0_9 = arith.constant 0 : index
    %c0_10 = arith.constant 0 : index
    %8 = vector.load %arg3[%c1, %c0_9, %c0_10] : memref<6x128x128xbf16, #tpu.memory_space<vmem>>, vector<1x128x128xbf16>
    %9 = vector.shape_cast %8 : vector<1x128x128xbf16> to vector<128x128xbf16>
    %c1_11 = arith.constant 1 : index
    %c0_12 = arith.constant 0 : index
    %c0_13 = arith.constant 0 : index
    %10 = vector.load %arg4[%c1_11, %c0_12, %c0_13] : memref<6x1x128xf32, #tpu.memory_space<vmem>>, vector<1x1x128xf32>
    %11 = vector.shape_cast %10 : vector<1x1x128xf32> to vector<1x128xf32>
    %12 = arith.truncf %3 : vector<128x128xf32> to vector<128x128xbf16>
    %cst = arith.constant dense<0.000000e+00> : vector<128x128xf32>
    %13 = tpu.matmul %12, %5, %cst {dimension_numbers = #tpu.dot_dimension_numbers<[1], [0], [0], [1], [0, 0, 1, 1], [], []>} : vector<128x128xbf16>, vector<128x128xbf16>, vector<128x128xf32> -> vector<128x128xf32>
    %14 = vector.broadcast %7 : vector<1x128xf32> to vector<128x128xf32>
    %15 = arith.addf %13, %14 : vector<128x128xf32>
    %cst_14 = arith.constant 0.000000e+00 : f32
    %16 = vector.broadcast %cst_14 : f32 to vector<128x128xf32>
    %17 = arith.maximumf %15, %16 : vector<128x128xf32>
    %18 = arith.addf %1, %17 : vector<128x128xf32>
    %19 = arith.truncf %18 : vector<128x128xf32> to vector<128x128xbf16>
    %cst_15 = arith.constant dense<0.000000e+00> : vector<128x128xf32>
    %20 = tpu.matmul %19, %9, %cst_15 {dimension_numbers = #tpu.dot_dimension_numbers<[1], [0], [0], [1], [0, 0, 1, 1], [], []>} : vector<128x128xbf16>, vector<128x128xbf16>, vector<128x128xf32> -> vector<128x128xf32>
    %21 = vector.broadcast %11 : vector<1x128xf32> to vector<128x128xf32>
    %22 = arith.addf %20, %21 : vector<128x128xf32>
    %cst_16 = arith.constant 0.000000e+00 : f32
    %23 = vector.broadcast %cst_16 : f32 to vector<128x128xf32>
    %24 = arith.maximumf %22, %23 : vector<128x128xf32>
    %25 = arith.addf %3, %24 : vector<128x128xf32>
    %c2 = arith.constant 2 : index
    %c0_17 = arith.constant 0 : index
    %c0_18 = arith.constant 0 : index
    %26 = vector.load %arg3[%c2, %c0_17, %c0_18] : memref<6x128x128xbf16, #tpu.memory_space<vmem>>, vector<1x128x128xbf16>
    %27 = vector.shape_cast %26 : vector<1x128x128xbf16> to vector<128x128xbf16>
    %c2_19 = arith.constant 2 : index
    %c0_20 = arith.constant 0 : index
    %c0_21 = arith.constant 0 : index
    %28 = vector.load %arg4[%c2_19, %c0_20, %c0_21] : memref<6x1x128xf32, #tpu.memory_space<vmem>>, vector<1x1x128xf32>
    %29 = vector.shape_cast %28 : vector<1x1x128xf32> to vector<1x128xf32>
    %c3 = arith.constant 3 : index
    %c0_22 = arith.constant 0 : index
    %c0_23 = arith.constant 0 : index
    %30 = vector.load %arg3[%c3, %c0_22, %c0_23] : memref<6x128x128xbf16, #tpu.memory_space<vmem>>, vector<1x128x128xbf16>
    %31 = vector.shape_cast %30 : vector<1x128x128xbf16> to vector<128x128xbf16>
    %c3_24 = arith.constant 3 : index
    %c0_25 = arith.constant 0 : index
    %c0_26 = arith.constant 0 : index
    %32 = vector.load %arg4[%c3_24, %c0_25, %c0_26] : memref<6x1x128xf32, #tpu.memory_space<vmem>>, vector<1x1x128xf32>
    %33 = vector.shape_cast %32 : vector<1x1x128xf32> to vector<1x128xf32>
    %34 = arith.truncf %25 : vector<128x128xf32> to vector<128x128xbf16>
    %cst_27 = arith.constant dense<0.000000e+00> : vector<128x128xf32>
    %35 = tpu.matmul %34, %27, %cst_27 {dimension_numbers = #tpu.dot_dimension_numbers<[1], [0], [0], [1], [0, 0, 1, 1], [], []>} : vector<128x128xbf16>, vector<128x128xbf16>, vector<128x128xf32> -> vector<128x128xf32>
    %36 = vector.broadcast %29 : vector<1x128xf32> to vector<128x128xf32>
    %37 = arith.addf %35, %36 : vector<128x128xf32>
    %cst_28 = arith.constant 0.000000e+00 : f32
    %38 = vector.broadcast %cst_28 : f32 to vector<128x128xf32>
    %39 = arith.maximumf %37, %38 : vector<128x128xf32>
    %40 = arith.addf %18, %39 : vector<128x128xf32>
    %41 = arith.truncf %40 : vector<128x128xf32> to vector<128x128xbf16>
    %cst_29 = arith.constant dense<0.000000e+00> : vector<128x128xf32>
    %42 = tpu.matmul %41, %31, %cst_29 {dimension_numbers = #tpu.dot_dimension_numbers<[1], [0], [0], [1], [0, 0, 1, 1], [], []>} : vector<128x128xbf16>, vector<128x128xbf16>, vector<128x128xf32> -> vector<128x128xf32>
    %43 = vector.broadcast %33 : vector<1x128xf32> to vector<128x128xf32>
    %44 = arith.addf %42, %43 : vector<128x128xf32>
    %cst_30 = arith.constant 0.000000e+00 : f32
    %45 = vector.broadcast %cst_30 : f32 to vector<128x128xf32>
    %46 = arith.maximumf %44, %45 : vector<128x128xf32>
    %47 = arith.addf %25, %46 : vector<128x128xf32>
    %c4 = arith.constant 4 : index
    %c0_31 = arith.constant 0 : index
    %c0_32 = arith.constant 0 : index
    %48 = vector.load %arg3[%c4, %c0_31, %c0_32] : memref<6x128x128xbf16, #tpu.memory_space<vmem>>, vector<1x128x128xbf16>
    %49 = vector.shape_cast %48 : vector<1x128x128xbf16> to vector<128x128xbf16>
    %c4_33 = arith.constant 4 : index
    %c0_34 = arith.constant 0 : index
    %c0_35 = arith.constant 0 : index
    %50 = vector.load %arg4[%c4_33, %c0_34, %c0_35] : memref<6x1x128xf32, #tpu.memory_space<vmem>>, vector<1x1x128xf32>
    %51 = vector.shape_cast %50 : vector<1x1x128xf32> to vector<1x128xf32>
    %c5 = arith.constant 5 : index
    %c0_36 = arith.constant 0 : index
    %c0_37 = arith.constant 0 : index
    %52 = vector.load %arg3[%c5, %c0_36, %c0_37] : memref<6x128x128xbf16, #tpu.memory_space<vmem>>, vector<1x128x128xbf16>
    %53 = vector.shape_cast %52 : vector<1x128x128xbf16> to vector<128x128xbf16>
    %c5_38 = arith.constant 5 : index
    %c0_39 = arith.constant 0 : index
    %c0_40 = arith.constant 0 : index
    %54 = vector.load %arg4[%c5_38, %c0_39, %c0_40] : memref<6x1x128xf32, #tpu.memory_space<vmem>>, vector<1x1x128xf32>
    %55 = vector.shape_cast %54 : vector<1x1x128xf32> to vector<1x128xf32>
    %56 = arith.truncf %47 : vector<128x128xf32> to vector<128x128xbf16>
    %cst_41 = arith.constant dense<0.000000e+00> : vector<128x128xf32>
    %57 = tpu.matmul %56, %49, %cst_41 {dimension_numbers = #tpu.dot_dimension_numbers<[1], [0], [0], [1], [0, 0, 1, 1], [], []>} : vector<128x128xbf16>, vector<128x128xbf16>, vector<128x128xf32> -> vector<128x128xf32>
    %58 = vector.broadcast %51 : vector<1x128xf32> to vector<128x128xf32>
    %59 = arith.addf %57, %58 : vector<128x128xf32>
    %cst_42 = arith.constant 0.000000e+00 : f32
    %60 = vector.broadcast %cst_42 : f32 to vector<128x128xf32>
    %61 = arith.maximumf %59, %60 : vector<128x128xf32>
    %62 = arith.addf %40, %61 : vector<128x128xf32>
    %63 = arith.truncf %62 : vector<128x128xf32> to vector<128x128xbf16>
    %cst_43 = arith.constant dense<0.000000e+00> : vector<128x128xf32>
    %64 = tpu.matmul %63, %53, %cst_43 {dimension_numbers = #tpu.dot_dimension_numbers<[1], [0], [0], [1], [0, 0, 1, 1], [], []>} : vector<128x128xbf16>, vector<128x128xbf16>, vector<128x128xf32> -> vector<128x128xf32>
    %65 = vector.broadcast %55 : vector<1x128xf32> to vector<128x128xf32>
    %66 = arith.addf %64, %65 : vector<128x128xf32>
    %cst_44 = arith.constant 0.000000e+00 : f32
    %67 = vector.broadcast %cst_44 : f32 to vector<128x128xf32>
    %68 = arith.maximumf %66, %67 : vector<128x128xf32>
    %69 = arith.addf %47, %68 : vector<128x128xf32>
    %70 = arith.truncf %62 : vector<128x128xf32> to vector<128x128xbf16>
    %c0_45 = arith.constant 0 : index
    %c0_46 = arith.constant 0 : index
    %c0_47 = arith.constant 0 : index
    %71 = vector.load %arg5[%c0_45, %c0_46, %c0_47] : memref<2x128x128xbf16, #tpu.memory_space<vmem>>, vector<1x128x128xbf16>
    %72 = vector.shape_cast %71 : vector<1x128x128xbf16> to vector<128x128xbf16>
    %cst_48 = arith.constant dense<0.000000e+00> : vector<128x128xf32>
    %73 = tpu.matmul %70, %72, %cst_48 {dimension_numbers = #tpu.dot_dimension_numbers<[1], [0], [0], [1], [0, 0, 1, 1], [], []>} : vector<128x128xbf16>, vector<128x128xbf16>, vector<128x128xf32> -> vector<128x128xf32>
    %74 = arith.truncf %69 : vector<128x128xf32> to vector<128x128xbf16>
    %c1_49 = arith.constant 1 : index
    %c0_50 = arith.constant 0 : index
    %c0_51 = arith.constant 0 : index
    %75 = vector.load %arg5[%c1_49, %c0_50, %c0_51] : memref<2x128x128xbf16, #tpu.memory_space<vmem>>, vector<1x128x128xbf16>
    %76 = vector.shape_cast %75 : vector<1x128x128xbf16> to vector<128x128xbf16>
    %cst_52 = arith.constant dense<0.000000e+00> : vector<128x128xf32>
    %77 = tpu.matmul %74, %76, %cst_52 {dimension_numbers = #tpu.dot_dimension_numbers<[1], [0], [0], [1], [0, 0, 1, 1], [], []>} : vector<128x128xbf16>, vector<128x128xbf16>, vector<128x128xf32> -> vector<128x128xf32>
    %78 = arith.addf %73, %77 : vector<128x128xf32>
    %c0_53 = arith.constant 0 : index
    %c0_54 = arith.constant 0 : index
    %79 = vector.load %arg6[%c0_53, %c0_54] : memref<1x128xf32, #tpu.memory_space<vmem>>, vector<1x128xf32>
    %80 = vector.broadcast %79 : vector<1x128xf32> to vector<128x128xf32>
    %81 = arith.addf %78, %80 : vector<128x128xf32>
    %82 = arith.truncf %81 : vector<128x128xf32> to vector<128x128xbf16>
    %c0_55 = arith.constant 0 : index
    %c0_56 = arith.constant 0 : index
    %83 = vector.load %arg7[%c0_55, %c0_56] : memref<128x128xbf16, #tpu.memory_space<vmem>>, vector<128x128xbf16>
    tpu.vector_store %arg7[%c0_55, %c0_56], %82 {strides = array<i32>} : memref<128x128xbf16, #tpu.memory_space<vmem>>, vector<128x128xbf16>,
    return
  }
  func.func @transform_0(%arg0: i32) -> (i32, i32) {
    %c0_i32 = arith.constant 0 : i32
    %c0_i32_0 = arith.constant 0 : i32
    return %arg0, %c0_i32 : i32, i32
  }
  func.func @transform_1(%arg0: i32) -> (i32, i32) {
    %c0_i32 = arith.constant 0 : i32
    %c0_i32_0 = arith.constant 0 : i32
    return %arg0, %c0_i32 : i32, i32
  }
  func.func @transform_2(%arg0: i32) -> (i32, i32, i32) {
    %c0_i32 = arith.constant 0 : i32
    %c0_i32_0 = arith.constant 0 : i32
    %c0_i32_1 = arith.constant 0 : i32
    %c0_i32_2 = arith.constant 0 : i32
    return %c0_i32, %c0_i32_0, %c0_i32_1 : i32, i32, i32
  }
  func.func @transform_3(%arg0: i32) -> (i32, i32, i32) {
    %c0_i32 = arith.constant 0 : i32
    %c0_i32_0 = arith.constant 0 : i32
    %c0_i32_1 = arith.constant 0 : i32
    %c0_i32_2 = arith.constant 0 : i32
    return %c0_i32, %c0_i32_0, %c0_i32_1 : i32, i32, i32
  }
  func.func @transform_4(%arg0: i32) -> (i32, i32, i32) {
    %c0_i32 = arith.constant 0 : i32
    %c0_i32_0 = arith.constant 0 : i32
    %c0_i32_1 = arith.constant 0 : i32
    %c0_i32_2 = arith.constant 0 : i32
    return %c0_i32, %c0_i32_0, %c0_i32_1 : i32, i32, i32
  }
  func.func @transform_5(%arg0: i32) -> (i32, i32) {
    %c0_i32 = arith.constant 0 : i32
    %c0_i32_0 = arith.constant 0 : i32
    %c0_i32_1 = arith.constant 0 : i32
    return %c0_i32, %c0_i32_0 : i32, i32
  }
  func.func @transform_6(%arg0: i32) -> (i32, i32) {
    %c0_i32 = arith.constant 0 : i32
    %c0_i32_0 = arith.constant 0 : i32
    return %arg0, %c0_i32 : i32, i32
  }
}

module attributes {stable_mosaic.version = 11 : i64} {
  func.func @_attn_gap_head_kernel(%arg0: i32, %arg1: memref<2x64x128xbf16, #tpu.memory_space<vmem>>, %arg2: memref<128x32xbf16, #tpu.memory_space<vmem>>, %arg3: memref<1x32xf32, #tpu.memory_space<vmem>>, %arg4: memref<32x128xbf16, #tpu.memory_space<vmem>>, %arg5: memref<1x128xf32, #tpu.memory_space<vmem>>, %arg6: memref<3xf32, #tpu.memory_space<smem>>, %arg7: memref<128x128xbf16, #tpu.memory_space<vmem>>, %arg8: memref<1x128xf32, #tpu.memory_space<vmem>>, %arg9: memref<128x128xbf16, #tpu.memory_space<vmem>>, %arg10: memref<1x128xf32, #tpu.memory_space<vmem>>, %arg11: memref<2x128xf32, #tpu.memory_space<vmem>>, %arg12: memref<2x128xf32, #tpu.memory_space<vmem>>) attributes {dimension_semantics = [#tpu.dimension_semantics<parallel>], iteration_bounds = array<i64: 1>, scalar_prefetch = 0 : i64, scratch_operands = 0 : i64, tpu.core_type = #tpu.core_type<tc>, window_params = [{transform_indices = @transform_0, window_bounds = array<i64: 2, 64, 128>}, {pipeline_mode = #tpu.pipeline_mode<synchronous>, transform_indices = @transform_1, window_bounds = array<i64: 128, 32>}, {pipeline_mode = #tpu.pipeline_mode<synchronous>, transform_indices = @transform_2, window_bounds = array<i64: 1, 32>}, {pipeline_mode = #tpu.pipeline_mode<synchronous>, transform_indices = @transform_3, window_bounds = array<i64: 32, 128>}, {pipeline_mode = #tpu.pipeline_mode<synchronous>, transform_indices = @transform_4, window_bounds = array<i64: 1, 128>}, {transform_indices = @transform_5, window_bounds = array<i64: 3>}, {pipeline_mode = #tpu.pipeline_mode<synchronous>, transform_indices = @transform_6, window_bounds = array<i64: 128, 128>}, {pipeline_mode = #tpu.pipeline_mode<synchronous>, transform_indices = @transform_7, window_bounds = array<i64: 1, 128>}, {pipeline_mode = #tpu.pipeline_mode<synchronous>, transform_indices = @transform_8, window_bounds = array<i64: 128, 128>}, {pipeline_mode = #tpu.pipeline_mode<synchronous>, transform_indices = @transform_9, window_bounds = array<i64: 1, 128>}, {transform_indices = @transform_10, window_bounds = array<i64: 2, 128>}, {transform_indices = @transform_11, window_bounds = array<i64: 2, 128>}]} {
    %c0 = arith.constant 0 : index
    %c0_0 = arith.constant 0 : index
    %c0_1 = arith.constant 0 : index
    %0 = vector.load %arg1[%c0, %c0_0, %c0_1] : memref<2x64x128xbf16, #tpu.memory_space<vmem>>, vector<2x64x128xbf16>
    %1 = arith.extf %0 : vector<2x64x128xbf16> to vector<2x64x128xf32>
    %cst = arith.constant dense<0.000000e+00> : vector<2x128xf32>
    %2 = vector.multi_reduction <add>, %1, %cst [1] : vector<2x64x128xf32> to vector<2x128xf32>
    %cst_2 = arith.constant 6.400000e+01 : f32
    %3 = vector.broadcast %cst_2 : f32 to vector<2x128xf32>
    %4 = arith.divf %2, %3 : vector<2x128xf32>
    %5 = arith.truncf %4 : vector<2x128xf32> to vector<2x128xbf16>
    %c0_3 = arith.constant 0 : index
    %c0_4 = arith.constant 0 : index
    %6 = vector.load %arg2[%c0_3, %c0_4] : memref<128x32xbf16, #tpu.memory_space<vmem>>, vector<128x32xbf16>
    %cst_5 = arith.constant dense<0.000000e+00> : vector<2x32xf32>
    %7 = tpu.matmul %5, %6, %cst_5 {dimension_numbers = #tpu.dot_dimension_numbers<[1], [0], [0], [1], [0, 0, 1, 1], [], []>} : vector<2x128xbf16>, vector<128x32xbf16>, vector<2x32xf32> -> vector<2x32xf32>
    %c0_6 = arith.constant 0 : index
    %c0_7 = arith.constant 0 : index
    %8 = vector.load %arg3[%c0_6, %c0_7] : memref<1x32xf32, #tpu.memory_space<vmem>>, vector<1x32xf32>
    %9 = vector.broadcast %8 : vector<1x32xf32> to vector<2x32xf32>
    %10 = arith.addf %7, %9 : vector<2x32xf32>
    %cst_8 = arith.constant 0.000000e+00 : f32
    %11 = vector.broadcast %cst_8 : f32 to vector<2x32xf32>
    %12 = arith.maximumf %10, %11 : vector<2x32xf32>
    %13 = arith.truncf %12 : vector<2x32xf32> to vector<2x32xbf16>
    %c0_9 = arith.constant 0 : index
    %c0_10 = arith.constant 0 : index
    %14 = vector.load %arg4[%c0_9, %c0_10] : memref<32x128xbf16, #tpu.memory_space<vmem>>, vector<32x128xbf16>
    %cst_11 = arith.constant dense<0.000000e+00> : vector<2x128xf32>
    %15 = tpu.matmul %13, %14, %cst_11 {dimension_numbers = #tpu.dot_dimension_numbers<[1], [0], [0], [1], [0, 0, 1, 1], [], []>} : vector<2x32xbf16>, vector<32x128xbf16>, vector<2x128xf32> -> vector<2x128xf32>
    %c0_12 = arith.constant 0 : index
    %c0_13 = arith.constant 0 : index
    %16 = vector.load %arg5[%c0_12, %c0_13] : memref<1x128xf32, #tpu.memory_space<vmem>>, vector<1x128xf32>
    %17 = vector.broadcast %16 : vector<1x128xf32> to vector<2x128xf32>
    %18 = arith.addf %15, %17 : vector<2x128xf32>
    %19 = arith.negf %18 : vector<2x128xf32>
    %20 = math.exp %19 : vector<2x128xf32>
    %cst_14 = arith.constant 1.000000e+00 : f32
    %21 = vector.broadcast %cst_14 : f32 to vector<2x128xf32>
    %22 = arith.addf %21, %20 : vector<2x128xf32>
    %23 = arith.divf %21, %22 : vector<2x128xf32>
    %24 = vector.shape_cast %23 : vector<2x128xf32> to vector<2x1x128xf32>
    %25 = vector.broadcast %24 : vector<2x1x128xf32> to vector<2x64x128xf32>
    %26 = arith.mulf %1, %25 : vector<2x64x128xf32>
    %cst_15 = arith.constant dense<0.000000e+00> : vector<2x64xf32>
    %27 = vector.multi_reduction <add>, %26, %cst_15 [2] : vector<2x64x128xf32> to vector<2x64xf32>
    %28 = vector.shape_cast %27 : vector<2x64xf32> to vector<2x64x1xf32>
    %cst_16 = arith.constant 1.280000e+02 : f32
    %29 = vector.broadcast %cst_16 : f32 to vector<2x64x1xf32>
    %30 = arith.divf %28, %29 : vector<2x64x1xf32>
    %cst_17 = arith.constant dense<0xFF800000> : vector<2x64xf32>
    %31 = vector.multi_reduction <maximumf>, %26, %cst_17 [2] : vector<2x64x128xf32> to vector<2x64xf32>
    %32 = vector.shape_cast %31 : vector<2x64xf32> to vector<2x64x1xf32>
    %c0_18 = arith.constant 0 : index
    %33 = memref.load %arg6[%c0_18] : memref<3xf32, #tpu.memory_space<smem>>
    %34 = vector.broadcast %33 : f32 to vector<2x64x1xf32>
    %35 = arith.mulf %30, %34 : vector<2x64x1xf32>
    %c1 = arith.constant 1 : index
    %36 = memref.load %arg6[%c1] : memref<3xf32, #tpu.memory_space<smem>>
    %37 = vector.broadcast %36 : f32 to vector<2x64x1xf32>
    %38 = arith.mulf %32, %37 : vector<2x64x1xf32>
    %39 = arith.addf %35, %38 : vector<2x64x1xf32>
    %c2 = arith.constant 2 : index
    %40 = memref.load %arg6[%c2] : memref<3xf32, #tpu.memory_space<smem>>
    %41 = vector.broadcast %40 : f32 to vector<2x64x1xf32>
    %42 = arith.addf %39, %41 : vector<2x64x1xf32>
    %43 = arith.negf %42 : vector<2x64x1xf32>
    %44 = math.exp %43 : vector<2x64x1xf32>
    %cst_19 = arith.constant 1.000000e+00 : f32
    %45 = vector.broadcast %cst_19 : f32 to vector<2x64x1xf32>
    %46 = arith.addf %45, %44 : vector<2x64x1xf32>
    %47 = arith.divf %45, %46 : vector<2x64x1xf32>
    %48 = vector.broadcast %47 : vector<2x64x1xf32> to vector<2x64x128xf32>
    %49 = arith.mulf %26, %48 : vector<2x64x128xf32>
    %cst_20 = arith.constant dense<0.000000e+00> : vector<2x128xf32>
    %50 = vector.multi_reduction <add>, %49, %cst_20 [1] : vector<2x64x128xf32> to vector<2x128xf32>
    %cst_21 = arith.constant 6.400000e+01 : f32
    %51 = vector.broadcast %cst_21 : f32 to vector<2x128xf32>
    %52 = arith.divf %50, %51 : vector<2x128xf32>
    %53 = arith.truncf %52 : vector<2x128xf32> to vector<2x128xbf16>
    %c0_22 = arith.constant 0 : index
    %c0_23 = arith.constant 0 : index
    %54 = vector.load %arg7[%c0_22, %c0_23] : memref<128x128xbf16, #tpu.memory_space<vmem>>, vector<128x128xbf16>
    %cst_24 = arith.constant dense<0.000000e+00> : vector<2x128xf32>
    %55 = tpu.matmul %53, %54, %cst_24 {dimension_numbers = #tpu.dot_dimension_numbers<[1], [0], [0], [1], [0, 0, 1, 1], [], []>} : vector<2x128xbf16>, vector<128x128xbf16>, vector<2x128xf32> -> vector<2x128xf32>
    %c0_25 = arith.constant 0 : index
    %c0_26 = arith.constant 0 : index
    %56 = vector.load %arg8[%c0_25, %c0_26] : memref<1x128xf32, #tpu.memory_space<vmem>>, vector<1x128xf32>
    %57 = vector.broadcast %56 : vector<1x128xf32> to vector<2x128xf32>
    %58 = arith.addf %55, %57 : vector<2x128xf32>
    %59 = arith.truncf %58 : vector<2x128xf32> to vector<2x128xbf16>
    %c0_27 = arith.constant 0 : index
    %c0_28 = arith.constant 0 : index
    %60 = vector.load %arg9[%c0_27, %c0_28] : memref<128x128xbf16, #tpu.memory_space<vmem>>, vector<128x128xbf16>
    %cst_29 = arith.constant dense<0.000000e+00> : vector<2x128xf32>
    %61 = tpu.matmul %59, %60, %cst_29 {dimension_numbers = #tpu.dot_dimension_numbers<[1], [0], [0], [1], [0, 0, 1, 1], [], []>} : vector<2x128xbf16>, vector<128x128xbf16>, vector<2x128xf32> -> vector<2x128xf32>
    %c0_30 = arith.constant 0 : index
    %c0_31 = arith.constant 0 : index
    %62 = vector.load %arg10[%c0_30, %c0_31] : memref<1x128xf32, #tpu.memory_space<vmem>>, vector<1x128xf32>
    %63 = vector.broadcast %62 : vector<1x128xf32> to vector<2x128xf32>
    %64 = arith.addf %61, %63 : vector<2x128xf32>
    %c0_32 = arith.constant 0 : index
    %c0_33 = arith.constant 0 : index
    %65 = vector.load %arg11[%c0_32, %c0_33] : memref<2x128xf32, #tpu.memory_space<vmem>>, vector<2x128xf32>
    tpu.vector_store %arg11[%c0_32, %c0_33], %58 {strides = array<i32>} : memref<2x128xf32, #tpu.memory_space<vmem>>, vector<2x128xf32>,
    %c0_34 = arith.constant 0 : index
    %c0_35 = arith.constant 0 : index
    %66 = vector.load %arg12[%c0_34, %c0_35] : memref<2x128xf32, #tpu.memory_space<vmem>>, vector<2x128xf32>
    tpu.vector_store %arg12[%c0_34, %c0_35], %64 {strides = array<i32>} : memref<2x128xf32, #tpu.memory_space<vmem>>, vector<2x128xf32>,
    return
  }
  func.func @transform_0(%arg0: i32) -> (i32, i32, i32) {
    %c0_i32 = arith.constant 0 : i32
    %c0_i32_0 = arith.constant 0 : i32
    %c0_i32_1 = arith.constant 0 : i32
    return %arg0, %c0_i32, %c0_i32_0 : i32, i32, i32
  }
  func.func @transform_1(%arg0: i32) -> (i32, i32) {
    %c0_i32 = arith.constant 0 : i32
    %c0_i32_0 = arith.constant 0 : i32
    %c0_i32_1 = arith.constant 0 : i32
    return %c0_i32, %c0_i32_0 : i32, i32
  }
  func.func @transform_2(%arg0: i32) -> (i32, i32) {
    %c0_i32 = arith.constant 0 : i32
    %c0_i32_0 = arith.constant 0 : i32
    %c0_i32_1 = arith.constant 0 : i32
    return %c0_i32, %c0_i32_0 : i32, i32
  }
  func.func @transform_3(%arg0: i32) -> (i32, i32) {
    %c0_i32 = arith.constant 0 : i32
    %c0_i32_0 = arith.constant 0 : i32
    %c0_i32_1 = arith.constant 0 : i32
    return %c0_i32, %c0_i32_0 : i32, i32
  }
  func.func @transform_4(%arg0: i32) -> (i32, i32) {
    %c0_i32 = arith.constant 0 : i32
    %c0_i32_0 = arith.constant 0 : i32
    %c0_i32_1 = arith.constant 0 : i32
    return %c0_i32, %c0_i32_0 : i32, i32
  }
  func.func @transform_5(%arg0: i32) -> i32 {
    %c0_i32 = arith.constant 0 : i32
    %c0_i32_0 = arith.constant 0 : i32
    return %c0_i32 : i32
  }
  func.func @transform_6(%arg0: i32) -> (i32, i32) {
    %c0_i32 = arith.constant 0 : i32
    %c0_i32_0 = arith.constant 0 : i32
    %c0_i32_1 = arith.constant 0 : i32
    return %c0_i32, %c0_i32_0 : i32, i32
  }
  func.func @transform_7(%arg0: i32) -> (i32, i32) {
    %c0_i32 = arith.constant 0 : i32
    %c0_i32_0 = arith.constant 0 : i32
    %c0_i32_1 = arith.constant 0 : i32
    return %c0_i32, %c0_i32_0 : i32, i32
  }
  func.func @transform_8(%arg0: i32) -> (i32, i32) {
    %c0_i32 = arith.constant 0 : i32
    %c0_i32_0 = arith.constant 0 : i32
    %c0_i32_1 = arith.constant 0 : i32
    return %c0_i32, %c0_i32_0 : i32, i32
  }
  func.func @transform_9(%arg0: i32) -> (i32, i32) {
    %c0_i32 = arith.constant 0 : i32
    %c0_i32_0 = arith.constant 0 : i32
    %c0_i32_1 = arith.constant 0 : i32
    return %c0_i32, %c0_i32_0 : i32, i32
  }
  func.func @transform_10(%arg0: i32) -> (i32, i32) {
    %c0_i32 = arith.constant 0 : i32
    %c0_i32_0 = arith.constant 0 : i32
    return %arg0, %c0_i32 : i32, i32
  }
  func.func @transform_11(%arg0: i32) -> (i32, i32) {
    %c0_i32 = arith.constant 0 : i32
    %c0_i32_0 = arith.constant 0 : i32
    return %arg0, %c0_i32 : i32, i32
  }
}

</mosaic_0001>

<bundles_post_ra>
// kernel: madrnet_forward.3
= control target key start
LH: loop header
LB: loop body
LE: loop exit
PB: predicated region body
PF: predicated region fallthrough
CT: control target
= control target key end

     0   :  { %17 = vsyncpa [#allocation4], 0  ;;  %s1738_s0 = inlined_call_operand.vmem [shape: bf16[2,64,128], index: 0, kind: input, shape index: {}]   ;;  %s1739_s1 = inlined_call_operand.vmem [shape: bf16[128,32], index: 1, kind: input, shape index: {}]   ;;  %s1740_s2 = inlined_call_operand.vmem [shape: f32[1,32], index: 2, kind: input, shape index: {}]   ;;  %s1741_s3 = inlined_call_operand.vmem [shape: bf16[32,128], index: 3, kind: input, shape index: {}]   ;;  %s1742_s4 = inlined_call_operand.vmem [shape: f32[1,128], index: 4, kind: input, shape index: {}]   ;;  %s1743_s5 = inlined_call_operand.vmem [shape: f32[3], index: 5, kind: input, shape index: {}]   ;;  %s1744_s6 = inlined_call_operand.vmem [shape: bf16[128,128], index: 6, kind: input, shape index: {}]   ;;  %s1745_s7 = inlined_call_operand.vmem [shape: f32[1,128], index: 7, kind: input, shape index: {}]   ;;  %s1746_s8 = inlined_call_operand.vmem [shape: bf16[128,128], index: 8, kind: input, shape index: {}]   ;;  %s1747_s9 = inlined_call_operand.vmem [shape: f32[1,128], index: 9, kind: input, shape index: {}]   ;;  %s1748_s10 = inlined_call_operand.hbm [shape: f32[2,128], index: 10, kind: output, shape index: {0}]   ;;  %s1749_s11 = inlined_call_operand.hbm [shape: f32[2,128], index: 11, kind: output, shape index: {1}]  }
   0x1   :  { %18 = vsyncpa [#allocation3], 0 }
   0x2   :  { %19 = vsyncpa [#allocation7], 0  ;;  %s36_s19 = sshll.u32 %s1743_s5, 4  ;;  %s37_s19 = int_to_ptr.vmem [resolvable:$true] %s36_s19 }
   0x3   :  { %s1200_s20 = scalar_lea.vmem %s37_s19, 16  ;;  %p1205_p1 = scmp.lt.s32.totalorder %s37_s19, %s37_s19 }
   0x4   :  { %p1201_p0 = scmp.ne.s32.totalorder %s37_s19, %s1200_s20  ;;  %p1206_p2 = scmp.lt.s32.totalorder %s1200_s20, %s1200_s20 }
   0x6   :  { %p1207_p3 = por %p1206_p2, %p1205_p1 }
   0x8   :  { %p1208_p4 = pnand %p1207_p3, %p1201_p0 }
   0xa   :  { %1211 = shalt.err (!%p1208_p4)
}
   0xb   :  { %s1262_s21 = smov [#allocation2]  }
   0xc   :  { %39 = dma.vmem_to_smem %s37_s19, 16, %s1262_s21, [#allocation4]  }
   0xd   :  { %1256 = dma.done.wait [#allocation4], 16  }
   0xe   :  { %1257 = vsyncadd [#allocation4], 4294967280 }
   0xf   :  { %51 = sfence }
  0x10   :  { %v1106_v0 = vld [vmem:[%s1739_s1] sm:$0xff]   ;;  %v1263_v1 = vmov 0.0   ;;  %v1107_v2 = vld [vmem:[%s1739_s1 + $0x8] sm:$0xff]   ;;  %vm1264_vm0 = vmmov 0   ;;  %v1108_v3 = vld [vmem:[%s1739_s1 + $0x10] sm:$0xff]   ;;  %vm143_vm1 = vcmask 1041409  }
  0x11   :  { %1032 = vmatprep.subr.bf16.mxu0 %v1263_v1  ;;  %1052 = vmatprep.subr.bf16.mxu1 %v1263_v1  ;;  %v1351_v4 = vld [vmem:[%s1738_s0] sm:$0xff]   ;;  %v1356_v5 = vld [vmem:[%s1738_s0 + $0x8] sm:$0xff]   ;;  %v1109_v10 = vld [vmem:[%s1739_s1 + $0x18] sm:$0xff]   ;;  %vm260_vm2 = vcmask 261120   ;;  %s927_s21 = sld [smem:[#allocation2 + $0x1]]  ;;  %s440_s22 = sld [smem:[#allocation2]] }
  0x12   :  { %1033 = vmatpush3.bf16.msra.mxu0 %v1106_v0  ;;  %1048 = vmatprep.mubr.msk.bf16.mxu0 %vm1264_vm0, %v1263_v1  ;;  %v965_v6 = vunpack.c.l.bf16 %v1351_v4  ;;  %v966_v7 = vunpack.c.h.bf16 %v1351_v4  ;;  %v1363_v8 = vld [vmem:[%s1738_s0 + $0x20] sm:$0xff]   ;;  %v1368_v9 = vld [vmem:[%s1738_s0 + $0x28] sm:$0xff]   ;;  %v1376_v11 = vld [vmem:[%s1738_s0 + $0x10] sm:$0xff]   ;;  %v969_v13 = vunpack.c.l.bf16 %v1356_v5  ;;  %v970_v18 = vunpack.c.h.bf16 %v1356_v5  ;;  %s928_s23 = sld [smem:[#allocation2 + $0x2]]  ;;  %s1266_s27 = smov [#allocation5]  }
  0x13   :  { %1034 = vmatprep.subr.bf16.mxu0 %v1263_v1  ;;  %1056 = vmatprep.mubr.msk.bf16.mxu1 %vm1264_vm0, %v1263_v1  ;;  %v1381_v12 = vld [vmem:[%s1738_s0 + $0x30] sm:$0xff]   ;;  %v981_v14 = vunpack.c.l.bf16 %v1363_v8  ;;  %v982_v15 = vunpack.c.h.bf16 %v1363_v8  ;;  %v985_v16 = vunpack.c.l.bf16 %v1368_v9  ;;  %v1110_v17 = vld [vmem:[%s1739_s1 + $0x20] sm:$0xff]   ;;  %v986_v19 = vunpack.c.h.bf16 %v1368_v9  ;;  %v1404_v22 = vld [vmem:[%s1738_s0 + $0x18] sm:$0xff]   ;;  %s890_s28 = sshll.u32 %s1266_s27, 4  ;;  %s891_s28 = int_to_ptr.vmem [resolvable:$true] %s890_s28 }
  0x14   :  { %v85_v20 = vadd.f32 %v966_v7, %v965_v6  ;;  %v1409_v23 = vld [vmem:[%s1738_s0 + $0x38] sm:$0xff]   ;;  %v973_v24 = vunpack.c.l.bf16 %v1376_v11  ;;  %v989_v25 = vunpack.c.l.bf16 %v1381_v12  ;;  %v1111_v28 = vld [vmem:[%s1739_s1 + $0x28] sm:$0xff]   ;;  %v974_v29 = vunpack.c.h.bf16 %v1376_v11  ;;  %v1112_v37 = vld [vmem:[%s1739_s1 + $0x30] sm:$0xff]   ;;  %s1212_s0 = scalar_lea.vmem %s891_s28, 32  ;;  %p1217_p6 = scmp.lt.s32.totalorder %s891_s28, %s891_s28 }
  0x15   :  { %v98_v21 = vadd.f32 %v982_v15, %v981_v14  ;;  %v990_v30 = vunpack.c.h.bf16 %v1381_v12  ;;  %v977_v33 = vunpack.c.l.bf16 %v1404_v22  ;;  %v993_v34 = vunpack.c.l.bf16 %v1409_v23  ;;  %v1113_v46 = vld [vmem:[%s1739_s1 + $0x38] sm:$0xff]   ;;  %p1213_p5 = scmp.ne.s32.totalorder %s891_s28, %s1212_s0  ;;  %p1218_p7 = scmp.lt.s32.totalorder %s1212_s0, %s1212_s0 }
  0x16   :  { %1035 = vmatpush3.bf16.msra.mxu0 %v1107_v2  ;;  %v86_v26 = vadd.f32 %v969_v13, %v85_v20  ;;  %v978_v38 = vunpack.c.h.bf16 %v1404_v22  ;;  %v994_v39 = vunpack.c.h.bf16 %v1409_v23  ;;  %v913_v20 = vld [vmem:[%s1740_s2] ss:$0 sm:$0xff]  ;;  %v1117_v22 = vld [vmem:[%s1744_s6 + $0x8] sm:$0xff]   ;;  %v1118_v23 = vld [vmem:[%s1744_s6 + $0x10] sm:$0xff]  }
  0x17   :  { %1036 = vmatprep.subr.bf16.mxu0 %v1263_v1  ;;  %v99_v27 = vadd.f32 %v985_v16, %v98_v21  ;;  %p1219_p8 = por %p1218_p7, %p1217_p6 }
  0x18   :  { %v87_v31 = vadd.f32 %v970_v18, %v86_v26 }
  0x19   :  { %v100_v32 = vadd.f32 %v986_v19, %v99_v27  ;;  %p1220_p9 = pnand %p1219_p8, %p1213_p5 }
  0x1a   :  { %1037 = vmatpush3.bf16.msra.mxu0 %v1108_v3  ;;  %v88_v35 = vadd.f32 %v973_v24, %v87_v31 }
  0x1b   :  { %1038 = vmatprep.subr.bf16.mxu0 %v1263_v1  ;;  %v101_v36 = vadd.f32 %v989_v25, %v100_v32 }
  0x1c   :  { %v89_v40 = vadd.f32 %v974_v29, %v88_v35 }
  0x1d   :  { %v102_v41 = vadd.f32 %v990_v30, %v101_v36  ;;  %v922_v36 = vld [vmem:[%s1742_s4] ss:$0 sm:$0xff] }
  0x1e   :  { %1039 = vmatpush3.bf16.msra.mxu0 %v1109_v10  ;;  %v90_v42 = vadd.f32 %v977_v33, %v89_v40  ;;  %v1114_v10 = vld [vmem:[%s1741_s3] sm:$0xff]  }
  0x1f   :  { %1040 = vmatprep.subr.bf16.mxu0 %v1263_v1  ;;  %v103_v43 = vadd.f32 %v993_v34, %v102_v41  ;;  %1053 = vmatpush3.bf16.msra.mxu1 %v1114_v10 }
  0x20   :  { %v91_v44 = vadd.f32 %v978_v38, %v90_v42  ;;  %1054 = vmatprep.subr.bf16.mxu1 %v1263_v1 }
  0x21   :  { %v104_v45 = vadd.f32 %v994_v39, %v103_v43 }
  0x22   :  { %1041 = vmatpush3.bf16.msra.mxu0 %v1110_v17  ;;  %v92_v47 = vrot.slane %v91_v44, 4  ;;  %v1115_v17 = vld [vmem:[%s1741_s3 + $0x8] sm:$0xff]  }
  0x23   :  { %1042 = vmatprep.subr.bf16.mxu0 %v1263_v1  ;;  %v105_v48 = vrot.slane %v104_v45, 4  ;;  %1055 = vmatpush3.bf16.msra.mxu1 %v1115_v17 }
  0x24   :  { %v93_v49 = vadd.f32 %v92_v47, %v91_v44  ;;  %1060 = vmatprep.subr.bf16.mxu1 %v1263_v1  ;;  %v1265_v47 = vmov 1966171168  }
  0x25   :  { %v106_v50 = vadd.f32 %v105_v48, %v104_v45  ;;  %v312_v48 = vunpack.c.l.s4 %v1265_v47 }
  0x26   :  { %1043 = vmatpush3.bf16.msra.mxu0 %v1111_v28  ;;  %v94_v51 = vrot.slane %v93_v49, 2 }
  0x27   :  { %1044 = vmatprep.subr.bf16.mxu0 %v1263_v1  ;;  %v107_v52 = vrot.slane %v106_v50, 2 }
  0x28   :  { %v95_v53 = vadd.f32 %v94_v51, %v93_v49  ;;  %v314_v49 = vlaneseq }
  0x29   :  { %v108_v54 = vadd.f32 %v107_v52, %v106_v50  ;;  %v313_v50 = vunpack.c.0.s8 %v312_v48 }
  0x2a   :  { %1045 = vmatpush3.bf16.msra.mxu0 %v1112_v37  ;;  %v96_v55 = vrot.slane %v95_v53, 1  ;;  %v315_v51 = vshrl.u32 %v314_v49, 7 }
  0x2b   :  { %1046 = vmatprep.subr.bf16.mxu0 %v1263_v1  ;;  %v109_v56 = vrot.slane %v108_v54, 1 }
  0x2c   :  { %v97_v57 = vadd.f32 %v96_v55, %v95_v53  ;;  %v316_v52 = vsub.s32 %v313_v50, %v315_v51  ;;  %v335_v55 = vsub.s32 0, %v315_v51 }
  0x2d   :  { %v110_v58 = vadd.f32 %v109_v56, %v108_v54 }
  0x2e   :  { %1047 = vmatpush3.bf16.msra.mxu0 %v1113_v46  ;;  %v112_v59 = vmul.f32 0.015625, %v97_v57 }
  0x2f   :  { %1080 = vmatprep.subr.bf16.mxu0 %v1263_v1  ;;  %v113_v60 = vmul.f32 0.015625, %v110_v58 }
  0x30   :  { %v114_v61 = vpack.c.bf16 %v112_v59, %v112_v59 }
  0x31   :  { %v115_v62 = vpack.c.bf16 %v113_v60, %v113_v60 }
  0x32   :  { %v141_v63 = vunpack.c.l.b16 %v114_v61 }
  0x33   :  { %v142_v0 = vunpack.c.l.b16 %v115_v62 }
  0x35   :  { %v144_v2 = vsel %vm143_vm1, %v142_v0, %v141_v63 }
  0x36   :  { %v145_v3 = vpack.c.b16 %v144_v2, %v144_v2 }
  0x38   :  { %1049 = vmatmul.mubr.bf16.vlgmr.msra.gmra.mrb[0].mxu0 %v145_v3  ;;  %v1127_v3 = vld [vmem:[%s1746_s8 + $0x18] sm:$0xff]  }
  0x39   :  { %1096 = vmatprep.mubr.msk.bf16.mxu0 %vm1264_vm0, %v1263_v1 }
 0x10b   :  { %v229_v21 = vpop.f32.mrb[0].mxu0 }
 0x10c   :  { %v230_v26 = vadd.f32 %v913_v20, %v229_v21  ;;  %v1050_v27 = vpop.f32.mrb[1].mxu0  ;;  %v1128_v20 = vld [vmem:[%s1746_s8 + $0x20] sm:$0xff]  }
 0x10d   :  { %v232_v28 = vpop.f32.mrb[2].mxu0  ;;  %v1129_v27 = vld [vmem:[%s1746_s8 + $0x28] sm:$0xff]  }
 0x10e   :  { %v235_v31 = vmax.f32 %v230_v26, 0.0  ;;  %v1051_v32 = vpop.f32.mrb[3].mxu0 }
 0x10f   :  { %v1130_v32 = vld [vmem:[%s1746_s8 + $0x30] sm:$0xff]  }
 0x110   :  { %v236_v35 = vpack.c.bf16 %v235_v31, %v235_v31 }
 0x112   :  { %1057 = vmatmul.mubr.msk.bf16.vlgmr.msra.gmra.mrb[0].mxu1 %vm260_vm2, %v236_v35 }
 0x113   :  { %1076 = vmatprep.mubr.msk.bf16.mxu1 %vm1264_vm0, %v1263_v1 }
 0x1e5   :  { %v298_v37 = vpop.f32.mrb[0].mxu1 }
 0x1e6   :  { %v299_v40 = vadd.f32 %v922_v36, %v298_v37  ;;  %v1058_v41 = vpop.f32.mrb[1].mxu1 }
 0x1e7   :  { %v301_v42 = vpop.f32.mrb[2].mxu1 }
 0x1e8   :  { %v926_v43 = vmul.f32 -1.442695, %v299_v40  ;;  %v1059_v44 = vpop.f32.mrb[3].mxu1  ;;  %v1633_v42 = vstv %s927_s21 }
 0x1ea   :  { %1132 = vpow2.f32 %v926_v43  ;;  %v1635_v43 = vstv %s440_s22 }
 0x1f4   :  { %v1133_v45 = vpop.eup %1132 }
 0x1f5   :  { %v307_v46 = vadd.f32 1.0, %v1133_v45 }
 0x1f7   :  { %1134 = vrcp.f32 %v307_v46 }
 0x201   :  { %v1135_v53 = vpop.eup %1134 }
 0x202   :  { %v317_v54 = vrot.slane %v1135_v53, %v316_v52 }
 0x204   :  { %v318_v56 = vcombine.high %v317_v54, %v317_v54  ;;  %v325_v57 = vrot.slane %v317_v54, %v316_v52 }
 0x206   :  { %v332_v58 = vrot.slane %v318_v56, %v316_v52  ;;  %v336_v59 = vrot.slane %v325_v57, %v335_v55  ;;  %v1642_v56 = vstv %s928_s23 }
 0x208   :  { %v340_v60 = vrot.slane %v332_v58, %v335_v55  ;;  %v1478_v61 = vmul.f32 %v966_v7, %v336_v59  ;;  %v1482_v62 = vmul.f32 %v965_v6, %v336_v59  ;;  %v1494_v7 = vmul.f32 %v969_v13, %v336_v59 }
 0x209   :  { %v1510_v13 = vmul.f32 %v970_v18, %v336_v59  ;;  %v1534_v9 = vmul.f32 %v974_v29, %v336_v59  ;;  %v1560_v12 = vmul.f32 %v978_v38, %v336_v59  ;;  %v1121_v29 = vld [vmem:[%s1744_s6 + $0x28] sm:$0xff]  }
 0x20a   :  { %410 = vmax.xlane.f32.xlu1 %v1478_v61  ;;  %359 = vadd.xlane.f32.xlu0 %v1482_v62  ;;  %v1488_v63 = vmul.f32 %v981_v14, %v340_v60  ;;  %v1498_v4 = vmul.f32 %v982_v15, %v340_v60  ;;  %v1504_v6 = vmul.f32 %v985_v16, %v340_v60  ;;  %v1125_v38 = vld [vmem:[%s1746_s8 + $0x8] sm:$0xff]  }
 0x20b   :  { %v1516_v8 = vmul.f32 %v986_v19, %v340_v60  ;;  %v1522_v14 = vmul.f32 %v973_v24, %v336_v59  ;;  %v1528_v5 = vmul.f32 %v989_v25, %v340_v60  ;;  %v1540_v15 = vmul.f32 %v990_v30, %v340_v60  ;;  %v1116_v19 = vld [vmem:[%s1744_s6] sm:$0xff]   ;;  %v1119_v24 = vld [vmem:[%s1744_s6 + $0x18] sm:$0xff]   ;;  %v1122_v30 = vld [vmem:[%s1744_s6 + $0x30] sm:$0xff]  }
 0x20c   :  { %v1546_v16 = vmul.f32 %v977_v33, %v336_v59  ;;  %v1552_v11 = vmul.f32 %v993_v34, %v340_v60  ;;  %v1564_v18 = vmul.f32 %v994_v39, %v340_v60  ;;  %1061 = vmatpush3.bf16.msra.mxu1 %v1116_v19  ;;  %v1120_v25 = vld [vmem:[%s1744_s6 + $0x20] sm:$0xff]   ;;  %v1123_v33 = vld [vmem:[%s1744_s6 + $0x38] sm:$0xff]   ;;  %v1126_v39 = vld [vmem:[%s1746_s8 + $0x10] sm:$0xff]  }
 0x20d   :  { %1062 = vmatprep.subr.bf16.mxu1 %v1263_v1  ;;  %v1124_v34 = vld [vmem:[%s1746_s8] sm:$0xff]  }
 0x20e   :  { %361 = vadd.xlane.f32.xlu0 %v1478_v61  ;;  %375 = vadd.xlane.f32.xlu1 %v1488_v63 }
 0x20f   :  { %1081 = vmatpush3.bf16.msra.mxu0 %v1124_v34 }
 0x210   :  { %1063 = vmatpush3.bf16.msra.mxu1 %v1117_v22  ;;  %1082 = vmatprep.subr.bf16.mxu0 %v1263_v1 }
 0x211   :  { %1064 = vmatprep.subr.bf16.mxu1 %v1263_v1 }
 0x212   :  { %363 = vadd.xlane.f32.xlu0 %v1494_v7  ;;  %377 = vadd.xlane.f32.xlu1 %v1498_v4 }
 0x213   :  { %1083 = vmatpush3.bf16.msra.mxu0 %v1125_v38 }
 0x214   :  { %1065 = vmatpush3.bf16.msra.mxu1 %v1118_v23  ;;  %1084 = vmatprep.subr.bf16.mxu0 %v1263_v1 }
 0x215   :  { %1066 = vmatprep.subr.bf16.mxu1 %v1263_v1 }
 0x216   :  { %408 = vmax.xlane.f32.xlu0 %v1482_v62  ;;  %379 = vadd.xlane.f32.xlu1 %v1504_v6 }
 0x217   :  { %1085 = vmatpush3.bf16.msra.mxu0 %v1126_v39 }
 0x218   :  { %1067 = vmatpush3.bf16.msra.mxu1 %v1119_v24  ;;  %1086 = vmatprep.subr.bf16.mxu0 %v1263_v1 }
 0x219   :  { %1068 = vmatprep.subr.bf16.mxu1 %v1263_v1 }
 0x21a   :  { %365 = vadd.xlane.f32.xlu0 %v1510_v13  ;;  %426 = vmax.xlane.f32.xlu1 %v1498_v4 }
 0x21b   :  { %1087 = vmatpush3.bf16.msra.mxu0 %v1127_v3 }
 0x21c   :  { %1069 = vmatpush3.bf16.msra.mxu1 %v1120_v25  ;;  %1088 = vmatprep.subr.bf16.mxu0 %v1263_v1 }
 0x21d   :  { %1070 = vmatprep.subr.bf16.mxu1 %v1263_v1 }
 0x21e   :  { %412 = vmax.xlane.f32.xlu0 %v1494_v7  ;;  %381 = vadd.xlane.f32.xlu1 %v1516_v8 }
 0x21f   :  { %1089 = vmatpush3.bf16.msra.mxu0 %v1128_v20 }
 0x220   :  { %1071 = vmatpush3.bf16.msra.mxu1 %v1121_v29  ;;  %1090 = vmatprep.subr.bf16.mxu0 %v1263_v1 }
 0x221   :  { %1072 = vmatprep.subr.bf16.mxu1 %v1263_v1 }
 0x222   :  { %367 = vadd.xlane.f32.xlu0 %v1522_v14  ;;  %428 = vmax.xlane.f32.xlu1 %v1504_v6 }
 0x223   :  { %1091 = vmatpush3.bf16.msra.mxu0 %v1129_v27 }
 0x224   :  { %1073 = vmatpush3.bf16.msra.mxu1 %v1122_v30  ;;  %1092 = vmatprep.subr.bf16.mxu0 %v1263_v1 }
 0x225   :  { %1074 = vmatprep.subr.bf16.mxu1 %v1263_v1 }
 0x226   :  { %414 = vmax.xlane.f32.xlu0 %v1510_v13  ;;  %383 = vadd.xlane.f32.xlu1 %v1528_v5 }
 0x227   :  { %1093 = vmatpush3.bf16.msra.mxu0 %v1130_v32 }
 0x228   :  { %1075 = vmatpush3.bf16.msra.mxu1 %v1123_v33  ;;  %1094 = vmatprep.subr.bf16.mxu0 %v1263_v1 }
 0x22a   :  { %369 = vadd.xlane.f32.xlu0 %v1534_v9  ;;  %430 = vmax.xlane.f32.xlu1 %v1516_v8 }
 0x22e   :  { %416 = vmax.xlane.f32.xlu0 %v1522_v14  ;;  %385 = vadd.xlane.f32.xlu1 %v1540_v15 }
 0x232   :  { %371 = vadd.xlane.f32.xlu0 %v1546_v16  ;;  %432 = vmax.xlane.f32.xlu1 %v1528_v5 }
 0x236   :  { %418 = vmax.xlane.f32.xlu0 %v1534_v9  ;;  %387 = vadd.xlane.f32.xlu1 %v1552_v11 }
 0x23a   :  { %424 = vmax.xlane.f32.xlu0 %v1488_v63  ;;  %434 = vmax.xlane.f32.xlu1 %v1540_v15 }
 0x23e   :  { %373 = vadd.xlane.f32.xlu0 %v1560_v12  ;;  %389 = vadd.xlane.f32.xlu1 %v1564_v18 }
 0x242   :  { %420 = vmax.xlane.f32.xlu0 %v1546_v16  ;;  %436 = vmax.xlane.f32.xlu1 %v1552_v11 }
 0x246   :  { %422 = vmax.xlane.f32.xlu0 %v1560_v12  ;;  %438 = vmax.xlane.f32.xlu1 %v1564_v18 }
 0x297   :  { %v411_v0 = vpop.xlane.xlu1 %410  ;;  %v360_v2 = vpop.xlane.xlu0 %359 }
 0x298   :  { %v392_v44 = vmul.f32 0.0078125, %v360_v2  ;;  %v461_v48 = vmul.f32 %v1633_v42, %v411_v0 }
 0x29a   :  { %v442_v1 = vmul.f32 %v1635_v43, %v392_v44 }
 0x29b   :  { %v362_v10 = vpop.xlane.xlu0 %361  ;;  %v1618_v17 = vpop.xlane.xlu1 %375 }
 0x29c   :  { %v393_v37 = vmul.f32 0.0078125, %v362_v10 }
 0x29e   :  { %v443_v45 = vmul.f32 %v1635_v43, %v393_v37 }
 0x29f   :  { %v364_v21 = vpop.xlane.xlu0 %363  ;;  %v378_v26 = vpop.xlane.xlu1 %377 }
 0x2a0   :  { %v401_v49 = vmul.f32 0.0078125, %v378_v26  ;;  %v477_v51 = vadd.f32 %v461_v48, %v443_v45  ;;  %v394_v52 = vmul.f32 0.0078125, %v364_v21 }
 0x2a2   :  { %v451_v58 = vmul.f32 %v1635_v43, %v401_v49  ;;  %v495_v23 = vadd.f32 %v1642_v56, %v477_v51  ;;  %v444_v24 = vmul.f32 %v1635_v43, %v394_v52 }
 0x2a3   :  { %v409_v28 = vpop.xlane.xlu0 %408  ;;  %v380_v31 = vpop.xlane.xlu1 %379 }
 0x2a4   :  { %v460_v50 = vmul.f32 %v1633_v42, %v409_v28  ;;  %v402_v57 = vmul.f32 0.0078125, %v380_v31  ;;  %v930_v20 = vmul.f32 -1.442695, %v495_v23 }
 0x2a6   :  { %v476_v59 = vadd.f32 %v460_v50, %v442_v1  ;;  %v452_v33 = vmul.f32 %v1635_v43, %v402_v57  ;;  %1136 = vpow2.f32 %v930_v20 }
 0x2a7   :  { %v366_v35 = vpop.xlane.xlu0 %365  ;;  %v427_v36 = vpop.xlane.xlu1 %426 }
 0x2a8   :  { %v469_v53 = vmul.f32 %v1633_v42, %v427_v36  ;;  %v395_v19 = vmul.f32 0.0078125, %v366_v35  ;;  %v494_v39 = vadd.f32 %v1642_v56, %v476_v59 }
 0x2aa   :  { %v485_v25 = vadd.f32 %v469_v53, %v451_v58  ;;  %v445_v2 = vmul.f32 %v1635_v43, %v395_v19  ;;  %v929_v36 = vmul.f32 -1.442695, %v494_v39  ;;  %v400_v58 = vmul.f32 0.0078125, %v1618_v17 }
 0x2ab   :  { %v413_v40 = vpop.xlane.xlu0 %412  ;;  %v382_v41 = vpop.xlane.xlu1 %381 }
 0x2ac   :  { %v462_v60 = vmul.f32 %v1633_v42, %v413_v40  ;;  %v403_v34 = vmul.f32 0.0078125, %v382_v41  ;;  %v503_v21 = vadd.f32 %v1642_v56, %v485_v25  ;;  %1138 = vpow2.f32 %v929_v36 }
 0x2ad   :  { %v450_v17 = vmul.f32 %v1635_v43, %v400_v58 }
 0x2ae   :  { %v478_v0 = vadd.f32 %v462_v60, %v444_v24  ;;  %v453_v31 = vmul.f32 %v1635_v43, %v403_v34  ;;  %v938_v45 = vmul.f32 -1.442695, %v503_v21 }
 0x2af   :  { %v368_v46 = vpop.xlane.xlu0 %367  ;;  %v429_v47 = vpop.xlane.xlu1 %428 }
 0x2b0   :  { %v470_v22 = vmul.f32 %v1633_v42, %v429_v47  ;;  %v396_v26 = vmul.f32 0.0078125, %v368_v46  ;;  %v496_v37 = vadd.f32 %v1642_v56, %v478_v0  ;;  %1140 = vpow2.f32 %v938_v45 }
 0x2b2   :  { %v486_v3 = vadd.f32 %v470_v22, %v452_v33  ;;  %v446_v47 = vmul.f32 %v1635_v43, %v396_v26  ;;  %v931_v52 = vmul.f32 -1.442695, %v496_v37 }
 0x2b3   :  { %v415_v54 = vpop.xlane.xlu0 %414  ;;  %v384_v55 = vpop.xlane.xlu1 %383 }
 0x2b4   :  { %v463_v38 = vmul.f32 %v1633_v42, %v415_v54  ;;  %v404_v35 = vmul.f32 0.0078125, %v384_v55  ;;  %v504_v41 = vadd.f32 %v1642_v56, %v486_v3  ;;  %1142 = vpow2.f32 %v931_v52 }
 0x2b6   :  { %v479_v32 = vadd.f32 %v463_v38, %v445_v2  ;;  %v454_v50 = vmul.f32 %v1635_v43, %v404_v35  ;;  %v939_v54 = vmul.f32 -1.442695, %v504_v41  ;;  %v1137_v2 = vpop.eup %1136 }
 0x2b7   :  { %v370_v29 = vpop.xlane.xlu0 %369  ;;  %v431_v30 = vpop.xlane.xlu1 %430  ;;  %v559_v41 = vadd.f32 1.0, %v1137_v2 }
 0x2b8   :  { %v471_v10 = vmul.f32 %v1633_v42, %v431_v30  ;;  %v497_v49 = vadd.f32 %v1642_v56, %v479_v32  ;;  %v397_v1 = vmul.f32 0.0078125, %v370_v29  ;;  %1144 = vpow2.f32 %v939_v54 }
 0x2ba   :  { %v487_v44 = vadd.f32 %v471_v10, %v453_v31  ;;  %v932_v19 = vmul.f32 -1.442695, %v497_v49  ;;  %v447_v22 = vmul.f32 %v1635_v43, %v397_v1 }
 0x2bb   :  { %v417_v27 = vpop.xlane.xlu0 %416  ;;  %v386_v28 = vpop.xlane.xlu1 %385 }
 0x2bc   :  { %v464_v40 = vmul.f32 %v1633_v42, %v417_v27  ;;  %v505_v55 = vadd.f32 %v1642_v56, %v487_v44  ;;  %v405_v25 = vmul.f32 0.0078125, %v386_v28  ;;  %1146 = vpow2.f32 %v932_v19  ;;  %v1139_v27 = vpop.eup %1138 }
 0x2bd   :  { %v1141_v45 = vpop.eup %1140 }
 0x2be   :  { %v480_v53 = vadd.f32 %v464_v40, %v446_v47  ;;  %v940_v29 = vmul.f32 -1.442695, %v505_v55  ;;  %v455_v10 = vmul.f32 %v1635_v43, %v405_v25  ;;  %v558_v47 = vadd.f32 1.0, %v1139_v27  ;;  %v1143_v49 = vpop.eup %1142 }
 0x2bf   :  { %v372_v48 = vpop.xlane.xlu0 %371  ;;  %v433_v46 = vpop.xlane.xlu1 %432  ;;  %v567_v58 = vadd.f32 1.0, %v1141_v45  ;;  %v560_v19 = vadd.f32 1.0, %v1143_v49 }
 0x2c0   :  { %v472_v51 = vmul.f32 %v1633_v42, %v433_v46  ;;  %v498_v24 = vadd.f32 %v1642_v56, %v480_v53  ;;  %1148 = vpow2.f32 %v940_v29  ;;  %v398_v28 = vmul.f32 0.0078125, %v372_v48 }
 0x2c2   :  { %v488_v57 = vadd.f32 %v472_v51, %v454_v50  ;;  %v933_v3 = vmul.f32 -1.442695, %v498_v24  ;;  %v448_v50 = vmul.f32 %v1635_v43, %v398_v28  ;;  %v1145_v53 = vpop.eup %1144 }
 0x2c3   :  { %v419_v59 = vpop.xlane.xlu0 %418  ;;  %v388_v60 = vpop.xlane.xlu1 %387  ;;  %v568_v24 = vadd.f32 1.0, %v1145_v53 }
 0x2c4   :  { %v465_v23 = vmul.f32 %v1633_v42, %v419_v59  ;;  %v506_v30 = vadd.f32 %v1642_v56, %v488_v57  ;;  %v406_v32 = vmul.f32 0.0078125, %v388_v60  ;;  %1150 = vpow2.f32 %v933_v3 }
 0x2c6   :  { %v481_v33 = vadd.f32 %v465_v23, %v447_v22  ;;  %v941_v21 = vmul.f32 -1.442695, %v506_v30  ;;  %v456_v48 = vmul.f32 %v1635_v43, %v406_v32  ;;  %v1147_v60 = vpop.eup %1146 }
 0x2c7   :  { %v425_v34 = vpop.xlane.xlu0 %424  ;;  %v435_v38 = vpop.xlane.xlu1 %434 }
 0x2c8   :  { %v499_v39 = vadd.f32 %v1642_v56, %v481_v33  ;;  %v468_v0 = vmul.f32 %v1633_v42, %v425_v34  ;;  %v473_v20 = vmul.f32 %v1633_v42, %v435_v38  ;;  %1152 = vpow2.f32 %v941_v21 }
 0x2ca   :  { %v484_v26 = vadd.f32 %v468_v0, %v450_v17  ;;  %v934_v31 = vmul.f32 -1.442695, %v499_v39  ;;  %v489_v35 = vadd.f32 %v473_v20, %v455_v10  ;;  %v1149_v30 = vpop.eup %1148  ;;  %v561_v39 = vadd.f32 1.0, %v1147_v60 }
 0x2cb   :  { %v374_v36 = vpop.xlane.xlu0 %373  ;;  %v390_v37 = vpop.xlane.xlu1 %389 }
 0x2cc   :  { %v502_v40 = vadd.f32 %v1642_v56, %v484_v26  ;;  %v507_v44 = vadd.f32 %v1642_v56, %v489_v35  ;;  %1154 = vpow2.f32 %v934_v31  ;;  %v399_v54 = vmul.f32 0.0078125, %v374_v36 }
 0x2cd   :  { %v407_v59 = vmul.f32 0.0078125, %v390_v37  ;;  %v569_v26 = vadd.f32 1.0, %v1149_v30 }
 0x2ce   :  { %v937_v46 = vmul.f32 -1.442695, %v502_v40  ;;  %v942_v1 = vmul.f32 -1.442695, %v507_v44  ;;  %v449_v33 = vmul.f32 %v1635_v43, %v399_v54  ;;  %v1151_v21 = vpop.eup %1150 }
 0x2cf   :  { %v421_v51 = vpop.xlane.xlu0 %420  ;;  %v437_v52 = vpop.xlane.xlu1 %436  ;;  %v457_v0 = vmul.f32 %v1635_v43, %v407_v59  ;;  %v562_v37 = vadd.f32 1.0, %v1151_v21 }
 0x2d0   :  { %1156 = vpow2.f32 %v937_v46  ;;  %v466_v55 = vmul.f32 %v1633_v42, %v421_v51  ;;  %v474_v57 = vmul.f32 %v1633_v42, %v437_v52 }
 0x2d1   :  { %1158 = vrcp.f32 %v559_v41 }
 0x2d2   :  { %1160 = vpow2.f32 %v942_v1  ;;  %v482_v22 = vadd.f32 %v466_v55, %v448_v50  ;;  %v490_v23 = vadd.f32 %v474_v57, %v456_v48  ;;  %v1153_v28 = vpop.eup %1152 }
 0x2d3   :  { %1162 = vrcp.f32 %v558_v47  ;;  %v423_v25 = vpop.xlane.xlu0 %422  ;;  %v439_v29 = vpop.xlane.xlu1 %438  ;;  %v570_v45 = vadd.f32 1.0, %v1153_v28 }
 0x2d4   :  { %v500_v34 = vadd.f32 %v1642_v56, %v482_v22  ;;  %v508_v38 = vadd.f32 %v1642_v56, %v490_v23  ;;  %v467_v17 = vmul.f32 %v1633_v42, %v423_v25  ;;  %1164 = vrcp.f32 %v567_v58 }
 0x2d5   :  { %v475_v2 = vmul.f32 %v1633_v42, %v439_v29  ;;  %1166 = vrcp.f32 %v560_v19 }
 0x2d6   :  { %v935_v3 = vmul.f32 -1.442695, %v500_v34  ;;  %v943_v10 = vmul.f32 -1.442695, %v508_v38  ;;  %v483_v20 = vadd.f32 %v467_v17, %v449_v33  ;;  %1168 = vrcp.f32 %v568_v24  ;;  %v1155_v32 = vpop.eup %1154 }
 0x2d7   :  { %v491_v27 = vadd.f32 %v475_v2, %v457_v0  ;;  %v563_v46 = vadd.f32 1.0, %v1155_v32 }
 0x2d8   :  { %1170 = vpow2.f32 %v935_v3  ;;  %v501_v31 = vadd.f32 %v1642_v56, %v483_v20 }
 0x2d9   :  { %1172 = vrcp.f32 %v561_v39  ;;  %v509_v35 = vadd.f32 %v1642_v56, %v491_v27 }
 0x2da   :  { %v1157_v36 = vpop.eup %1156  ;;  %1174 = vpow2.f32 %v943_v10  ;;  %v936_v43 = vmul.f32 -1.442695, %v501_v31 }
 0x2db   :  { %v1159_v42 = vpop.eup %1158  ;;  %1176 = vrcp.f32 %v569_v26  ;;  %v566_v40 = vadd.f32 1.0, %v1157_v36  ;;  %v944_v41 = vmul.f32 -1.442695, %v509_v35 }
 0x2dc   :  { %v1161_v44 = vpop.eup %1160  ;;  %1178 = vpow2.f32 %v936_v43  ;;  %v607_v22 = vmul.f32 %v1159_v42, %v1478_v61 }
 0x2dd   :  { %v1163_v47 = vpop.eup %1162  ;;  %1180 = vrcp.f32 %v566_v40  ;;  %v571_v50 = vadd.f32 1.0, %v1161_v44 }
 0x2de   :  { %1182 = vpow2.f32 %v944_v41  ;;  %v1165_v49 = vpop.eup %1164  ;;  %v606_v58 = vmul.f32 %v1163_v47, %v1482_v62 }
 0x2df   :  { %1184 = vrcp.f32 %v562_v37  ;;  %v1167_v48 = vpop.eup %1166  ;;  %v615_v23 = vmul.f32 %v1165_v49, %v1498_v4 }
 0x2e0   :  { %1186 = vrcp.f32 %v570_v45  ;;  %v1169_v56 = vpop.eup %1168  ;;  %v608_v24 = vmul.f32 %v1167_v48, %v1494_v7  ;;  %v622_v34 = vadd.f32 %v607_v22, %v606_v58 }
 0x2e1   :  { %1188 = vrcp.f32 %v563_v46  ;;  %v616_v38 = vmul.f32 %v1169_v56, %v1504_v6 }
 0x2e2   :  { %v1171_v1 = vpop.eup %1170  ;;  %1190 = vrcp.f32 %v571_v50  ;;  %v623_v0 = vadd.f32 %v622_v34, %v608_v24 }
 0x2e3   :  { %v1173_v51 = vpop.eup %1172  ;;  %v564_v52 = vadd.f32 1.0, %v1171_v1 }
 0x2e4   :  { %v1175_v53 = vpop.eup %1174  ;;  %v609_v62 = vmul.f32 %v1173_v51, %v1510_v13 }
 0x2e5   :  { %v1177_v54 = vpop.eup %1176  ;;  %1192 = vrcp.f32 %v564_v52  ;;  %v572_v55 = vadd.f32 1.0, %v1175_v53 }
 0x2e6   :  { %v1179_v57 = vpop.eup %1178  ;;  %v617_v61 = vmul.f32 %v1177_v54, %v1516_v8 }
 0x2e7   :  { %v1181_v59 = vpop.eup %1180  ;;  %1194 = vrcp.f32 %v572_v55  ;;  %v565_v60 = vadd.f32 1.0, %v1179_v57  ;;  %v1131_v55 = vld [vmem:[%s1746_s8 + $0x38] sm:$0xff]   ;;  %v945_v57 = vld [vmem:[%s1745_s7] ss:$0 sm:$0xff] }
 0x2e8   :  { %v1183_v19 = vpop.eup %1182  ;;  %v614_v25 = vmul.f32 %v1181_v59, %v1488_v63  ;;  %v624_v63 = vadd.f32 %v623_v0, %v609_v62  ;;  %1095 = vmatpush3.bf16.msra.mxu0 %v1131_v55 }
 0x2e9   :  { %v1185_v29 = vpop.eup %1184  ;;  %1196 = vrcp.f32 %v565_v60  ;;  %v573_v30 = vadd.f32 1.0, %v1183_v19 }
 0x2ea   :  { %v1187_v33 = vpop.eup %1186  ;;  %v635_v17 = vadd.f32 %v615_v23, %v614_v25  ;;  %v610_v4 = vmul.f32 %v1185_v29, %v1522_v14 }
 0x2eb   :  { %v1189_v39 = vpop.eup %1188  ;;  %1198 = vrcp.f32 %v573_v30  ;;  %v618_v3 = vmul.f32 %v1187_v33, %v1528_v5 }
 0x2ec   :  { %v636_v7 = vadd.f32 %v635_v17, %v616_v38  ;;  %v1191_v2 = vpop.eup %1190  ;;  %v611_v10 = vmul.f32 %v1189_v39, %v1534_v9  ;;  %v625_v6 = vadd.f32 %v624_v63, %v610_v4 }
 0x2ed   :  { %v619_v13 = vmul.f32 %v1191_v2, %v1540_v15 }
 0x2ee   :  { %v637_v20 = vadd.f32 %v636_v7, %v617_v61  ;;  %v626_v31 = vadd.f32 %v625_v6, %v611_v10 }
 0x2ef   :  { %v1193_v21 = vpop.eup %1192 }
 0x2f0   :  { %v638_v26 = vadd.f32 %v637_v20, %v618_v3  ;;  %v612_v27 = vmul.f32 %v1193_v21, %v1546_v16 }
 0x2f1   :  { %v1195_v28 = vpop.eup %1194 }
 0x2f2   :  { %v639_v8 = vadd.f32 %v638_v26, %v619_v13  ;;  %v620_v14 = vmul.f32 %v1195_v28, %v1552_v11  ;;  %v627_v36 = vadd.f32 %v626_v31, %v612_v27 }
 0x2f3   :  { %v1197_v32 = vpop.eup %1196 }
 0x2f4   :  { %v613_v35 = vmul.f32 %v1197_v32, %v1560_v12  ;;  %v640_v5 = vadd.f32 %v639_v8, %v620_v14 }
 0x2f5   :  { %v1199_v43 = vpop.eup %1198 }
 0x2f6   :  { %v621_v9 = vmul.f32 %v1199_v43, %v1564_v18  ;;  %v628_v42 = vadd.f32 %v627_v36, %v613_v35 }
 0x2f8   :  { %v629_v37 = vrot.slane %v628_v42, 4  ;;  %v641_v40 = vadd.f32 %v640_v5, %v621_v9 }
 0x2fa   :  { %v630_v41 = vadd.f32 %v629_v37, %v628_v42  ;;  %v642_v15 = vrot.slane %v641_v40, 4 }
 0x2fc   :  { %v631_v44 = vrot.slane %v630_v41, 2  ;;  %v643_v16 = vadd.f32 %v642_v15, %v641_v40 }
 0x2fe   :  { %v632_v45 = vadd.f32 %v631_v44, %v630_v41  ;;  %v644_v47 = vrot.slane %v643_v16, 2 }
 0x300   :  { %v633_v46 = vrot.slane %v632_v45, 1  ;;  %v645_v49 = vadd.f32 %v644_v47, %v643_v16 }
 0x302   :  { %v634_v11 = vadd.f32 %v633_v46, %v632_v45  ;;  %v646_v50 = vrot.slane %v645_v49, 1 }
 0x304   :  { %v647_v48 = vadd.f32 %v646_v50, %v645_v49  ;;  %v648_v12 = vmul.f32 0.015625, %v634_v11 }
 0x306   :  { %v649_v56 = vmul.f32 0.015625, %v647_v48  ;;  %v650_v1 = vpack.c.bf16 %v648_v12, %v648_v12 }
 0x308   :  { %v651_v51 = vpack.c.bf16 %v649_v56, %v649_v56  ;;  %v677_v52 = vunpack.c.l.b16 %v650_v1 }
 0x30a   :  { %v678_v18 = vunpack.c.l.b16 %v651_v51 }
 0x30c   :  { %v679_v53 = vsel %vm143_vm1, %v678_v18, %v677_v52 }
 0x30d   :  { %v680_v54 = vpack.c.b16 %v679_v53, %v679_v53 }
 0x30f   :  { %1077 = vmatmul.mubr.bf16.vlgmr.msra.gmra.mrb[4].mxu1 %v680_v54 }
 0x3e2   :  { %v764_v58 = vpop.f32.mrb[4].mxu1 }
 0x3e3   :  { %v765_v59 = vadd.f32 %v945_v57, %v764_v58  ;;  %v1078_v60 = vpop.f32.mrb[5].mxu1 }
 0x3e4   :  { %v767_v19 = vpop.f32.mrb[6].mxu1 }
 0x3e5   :  { %v770_v22 = vpack.c.bf16 %v765_v59, %v765_v59  ;;  %882 = vst [vmem:[#allocation5] sm:$0x3] %v765_v59  ;;  %v1079_v23 = vpop.f32.mrb[7].mxu1 }
 0x3e7   :  { %1097 = vmatmul.mubr.bf16.vlgmr.msra.gmra.mrb[4].mxu0 %v770_v22 }
 0x3e8   :  { %1223 = shalt.err (!%p1220_p9)
}
 0x3e9   :  { %s1224_s29 = scalar_lea.hbm %s1748_s10, 32 }
 0x3ea   :  { %p1225_p10 = scmp.ne.s32.totalorder %s1748_s10, %s1224_s29  ;;  %p1228_p11 = scmp.lt.u32.totalorder %s1224_s29, %s1748_s10 }
 0x3ec   :  { %p1230_p12 = pnand %p1228_p11, %p1225_p10 }
 0x3ee   :  { %1233 = shalt.err (!%p1230_p12)
}
 0x3ef   :  { %893 = dma.vmem_to_hbm [thread:$0]  %s891_s28, 32, %s1748_s10, [#allocation3]   ;;  %v954_v24 = vld [vmem:[%s1747_s9] ss:$0 sm:$0xff] }
 0x3f0   :  { %s1267_s17 = smov [#allocation6]  }
 0x3f1   :  { %s900_s3 = sshll.u32 %s1267_s17, 4  ;;  %s901_s3 = int_to_ptr.vmem [resolvable:$true] %s900_s3 }
 0x3f2   :  { %s1234_s18 = scalar_lea.vmem %s901_s3, 32  ;;  %p1239_p0 = scmp.lt.s32.totalorder %s901_s3, %s901_s3 }
 0x3f3   :  { %p1235_p13 = scmp.ne.s32.totalorder %s901_s3, %s1234_s18  ;;  %p1240_p1 = scmp.lt.s32.totalorder %s1234_s18, %s1234_s18 }
 0x3f5   :  { %p1241_p2 = por %p1240_p1, %p1239_p0 }
 0x3f7   :  { %p1242_p3 = pnand %p1241_p2, %p1235_p13 }
 0x4ba   :  { %v876_v25 = vpop.f32.mrb[4].mxu0 }
 0x4bb   :  { %v877_v29 = vadd.f32 %v954_v24, %v876_v25  ;;  %v1098_v30 = vpop.f32.mrb[5].mxu0 }
 0x4bc   :  { %v879_v33 = vpop.f32.mrb[6].mxu0 }
 0x4bd   :  { %883 = vst [vmem:[#allocation6] sm:$0x3] %v877_v29  ;;  %v1099_v34 = vpop.f32.mrb[7].mxu0 }
 0x4be   :  { %1245 = shalt.err (!%p1242_p3)
}
 0x4bf   :  { %s1246_s9 = scalar_lea.hbm %s1749_s11, 32 }
 0x4c0   :  { %p1247_p4 = scmp.ne.s32.totalorder %s1749_s11, %s1246_s9  ;;  %p1250_p5 = scmp.lt.u32.totalorder %s1246_s9, %s1749_s11 }
 0x4c2   :  { %p1252_p6 = pnand %p1250_p5, %p1247_p4 }
 0x4c4   :  { %1255 = shalt.err (!%p1252_p6)
}
 0x4c5   :  { %903 = dma.vmem_to_hbm [thread:$0]  %s901_s3, 32, %s1749_s11, [#allocation7]  }
 0x4c6   :  { %1258 = dma.done.wait [#allocation3], 32  }
 0x4c7   :  { %1259 = vsyncadd [#allocation3], 4294967264 }
 0x4c8   :  { %1260 = dma.done.wait [#allocation7], 32  }
 0x4c9   :  { %1261 = vsyncadd [#allocation7], 4294967264 }
 0x4ca   :  { %910 = vsyncpa [#allocation3], 1 }
 0x4cb   :  { %911 = vsyncpa [#allocation7], 1 }
 0x4cc   :  { %912 = vsyncpa [#allocation4], 1 }

// kernel: madrnet_forward.2
= control target key start
LH: loop header
LB: loop body
LE: loop exit
PB: predicated region body
PF: predicated region fallthrough
CT: control target
= control target key end

     0   :  { %s3358_s2 = inlined_call_operand.vmem [shape: bf16[6,128,128], index: 2, kind: input, shape index: {}]   ;;  %s3359_s1 = inlined_call_operand.vmem [shape: bf16[128,128], index: 1, kind: input, shape index: {}]   ;;  %s3360_s3 = inlined_call_operand.vmem [shape: f32[6,1,128], index: 3, kind: input, shape index: {}]   ;;  %s3361_s0 = inlined_call_operand.vmem [shape: bf16[128,128], index: 0, kind: input, shape index: {}]   ;;  %s3362_s4 = inlined_call_operand.vmem [shape: bf16[2,128,128], index: 4, kind: input, shape index: {}]   ;;  %s3363_s5 = inlined_call_operand.vmem [shape: f32[1,128], index: 5, kind: input, shape index: {}]   ;;  %s3364_s6 = inlined_call_operand.vmem [shape: bf16[128,128], index: 6, kind: output, shape index: {}]  }
   0x1   :  { %v2522_v0 = vld [vmem:[%s3358_s2] sm:$0xff]   ;;  %v2523_v1 = vld [vmem:[%s3358_s2 + $0x8] sm:$0xff]   ;;  %v2524_v2 = vld [vmem:[%s3358_s2 + $0x10] sm:$0xff]  }
   0x2   :  { %2250 = vmatprep.subr.bf16.mxu1 %v2522_v0  ;;  %v2525_v3 = vld [vmem:[%s3358_s2 + $0x18] sm:$0xff]   ;;  %v2652_v4 = vld [vmem:[%s3359_s1] sm:$0xff]   ;;  %v2527_v6 = vld [vmem:[%s3358_s2 + $0x28] sm:$0xff]  }
   0x3   :  { %2251 = vmatpush3.bf16.msra.mxu1 %v2522_v0  ;;  %2266 = vmatprep.mubr.bf16.mxu1 %v2652_v4  ;;  %v2526_v5 = vld [vmem:[%s3358_s2 + $0x20] sm:$0xff]   ;;  %v2528_v7 = vld [vmem:[%s3358_s2 + $0x30] sm:$0xff]   ;;  %v2529_v8 = vld [vmem:[%s3358_s2 + $0x38] sm:$0xff]  }
   0x4   :  { %2252 = vmatprep.subr.bf16.mxu1 %v2523_v1  ;;  %v2670_v9 = vld [vmem:[%s3359_s1 + $0x8] sm:$0xff]   ;;  %v2675_v10 = vld [vmem:[%s3359_s1 + $0x10] sm:$0xff]   ;;  %v2538_v11 = vld [vmem:[%s3358_s2 + $0x40] sm:$0xff]  }
   0x5   :  { %v2539_v12 = vld [vmem:[%s3358_s2 + $0x48] sm:$0xff]   ;;  %v2686_v13 = vld [vmem:[%s3359_s1 + $0x18] sm:$0xff]   ;;  %v2692_v14 = vld [vmem:[%s3359_s1 + $0x20] sm:$0xff]  }
   0x6   :  { %v2540_v15 = vld [vmem:[%s3358_s2 + $0x50] sm:$0xff]   ;;  %v2541_v16 = vld [vmem:[%s3358_s2 + $0x58] sm:$0xff]   ;;  %v2706_v17 = vld [vmem:[%s3359_s1 + $0x28] sm:$0xff]  }
   0x7   :  { %2253 = vmatpush3.bf16.msra.mxu1 %v2523_v1  ;;  %v2711_v18 = vld [vmem:[%s3359_s1 + $0x30] sm:$0xff]   ;;  %v2542_v19 = vld [vmem:[%s3358_s2 + $0x60] sm:$0xff]   ;;  %v2721_v20 = vld [vmem:[%s3359_s1 + $0x38] sm:$0xff]  }
   0x8   :  { %2254 = vmatprep.subr.bf16.mxu1 %v2524_v2  ;;  %v2543_v21 = vld [vmem:[%s3358_s2 + $0x68] sm:$0xff]   ;;  %v2544_v22 = vld [vmem:[%s3358_s2 + $0x70] sm:$0xff]   ;;  %v2545_v23 = vld [vmem:[%s3358_s2 + $0x78] sm:$0xff]  }
   0x9   :  { %v2546_v24 = vld [vmem:[%s3358_s2 + $0x80] sm:$0xff]   ;;  %v2547_v25 = vld [vmem:[%s3358_s2 + $0x88] sm:$0xff]   ;;  %v2548_v26 = vld [vmem:[%s3358_s2 + $0x90] sm:$0xff]  }
   0xa   :  { %2314 = vmatprep.subr.bf16.mxu0 %v2546_v24  ;;  %v2549_v27 = vld [vmem:[%s3358_s2 + $0x98] sm:$0xff]   ;;  %v2550_v28 = vld [vmem:[%s3358_s2 + $0xa0] sm:$0xff]   ;;  %v2108_v34 = vld [vmem:[%s3361_s0 + $0x8] sm:$0xff]  }
   0xb   :  { %2255 = vmatpush3.bf16.msra.mxu1 %v2524_v2  ;;  %2315 = vmatpush3.bf16.msra.mxu0 %v2546_v24  ;;  %v2751_v29 = vld [vmem:[%s3360_s3] ss:$0 sm:$0xff]  ;;  %v2043_v37 = vunpack.c.h.bf16 %v2108_v34  ;;  %v2042_v44 = vunpack.c.l.bf16 %v2108_v34  ;;  %v2109_v54 = vld [vmem:[%s3361_s0 + $0x10] sm:$0xff]   ;;  %v2110_v56 = vld [vmem:[%s3361_s0 + $0x18] sm:$0xff]  }
   0xc   :  { %2256 = vmatprep.subr.bf16.mxu1 %v2525_v3  ;;  %2316 = vmatprep.subr.bf16.mxu0 %v2547_v25  ;;  %v2037_v32 = vld [vmem:[%s3361_s0] sm:$0xff]   ;;  %v2051_v61 = vunpack.c.h.bf16 %v2110_v56  ;;  %v2046_v0 = vunpack.c.l.bf16 %v2109_v54  ;;  %v2047_v2 = vunpack.c.h.bf16 %v2109_v54  ;;  %v2112_v24 = vld [vmem:[%s3361_s0 + $0x28] sm:$0xff]  }
   0xd   :  { %v2038_v40 = vunpack.c.l.bf16 %v2037_v32  ;;  %v2039_v42 = vunpack.c.h.bf16 %v2037_v32 }
   0xf   :  { %2257 = vmatpush3.bf16.msra.mxu1 %v2525_v3  ;;  %2317 = vmatpush3.bf16.msra.mxu0 %v2547_v25 }
  0x10   :  { %2258 = vmatprep.subr.bf16.mxu1 %v2526_v5  ;;  %2318 = vmatprep.subr.bf16.mxu0 %v2548_v26 }
  0x13   :  { %2259 = vmatpush3.bf16.msra.mxu1 %v2526_v5  ;;  %2319 = vmatpush3.bf16.msra.mxu0 %v2548_v26  ;;  %v2050_v5 = vunpack.c.l.bf16 %v2110_v56 }
  0x14   :  { %2260 = vmatprep.subr.bf16.mxu1 %v2527_v6  ;;  %2320 = vmatprep.subr.bf16.mxu0 %v2549_v27 }
  0x17   :  { %2261 = vmatpush3.bf16.msra.mxu1 %v2527_v6  ;;  %2321 = vmatpush3.bf16.msra.mxu0 %v2549_v27 }
  0x18   :  { %2262 = vmatprep.subr.bf16.mxu1 %v2528_v7  ;;  %2322 = vmatprep.subr.bf16.mxu0 %v2550_v28 }
  0x1b   :  { %2263 = vmatpush3.bf16.msra.mxu1 %v2528_v7  ;;  %2323 = vmatpush3.bf16.msra.mxu0 %v2550_v28  ;;  %v2059_v28 = vunpack.c.h.bf16 %v2112_v24 }
  0x1c   :  { %2264 = vmatprep.subr.bf16.mxu1 %v2529_v8 }
  0x1f   :  { %2265 = vmatpush3.bf16.msra.mxu1 %v2529_v8 }
  0x20   :  { %2282 = vmatprep.subr.bf16.mxu1 %v2538_v11 }
  0x22   :  { %2267 = vmatmul.mubr.bf16.vlgmr.msra.gmra.mrb[0].mxu1 %v2670_v9 }
  0x23   :  { %2270 = vmatprep.mubr.bf16.mxu1 %v2675_v10  ;;  %2283 = vmatpush3.bf16.msra.mxu1 %v2538_v11 }
  0x24   :  { %2284 = vmatprep.subr.bf16.mxu1 %v2539_v12 }
  0x27   :  { %2285 = vmatpush3.bf16.msra.mxu1 %v2539_v12 }
  0x28   :  { %2286 = vmatprep.subr.bf16.mxu1 %v2540_v15 }
  0x2a   :  { %2271 = vmatmul.mubr.bf16.gmra.mrb[4].mxu1 %v2686_v13 }
  0x2b   :  { %2274 = vmatprep.mubr.bf16.mxu1 %v2692_v14  ;;  %2287 = vmatpush3.bf16.msra.mxu1 %v2540_v15 }
  0x2c   :  { %2288 = vmatprep.subr.bf16.mxu1 %v2541_v16 }
  0x2f   :  { %2289 = vmatpush3.bf16.msra.mxu1 %v2541_v16 }
  0x30   :  { %2290 = vmatprep.subr.bf16.mxu1 %v2542_v19 }
  0x32   :  { %2275 = vmatmul.mubr.bf16.gmra.mrb[8].mxu1 %v2706_v17 }
  0x33   :  { %2278 = vmatprep.mubr.bf16.mxu1 %v2711_v18  ;;  %2291 = vmatpush3.bf16.msra.mxu1 %v2542_v19 }
  0x34   :  { %2292 = vmatprep.subr.bf16.mxu1 %v2543_v21 }
  0x37   :  { %2293 = vmatpush3.bf16.msra.mxu1 %v2543_v21 }
  0x38   :  { %2294 = vmatprep.subr.bf16.mxu1 %v2544_v22 }
  0x3a   :  { %2279 = vmatmul.mubr.bf16.gmra.mrb[12].mxu1 %v2721_v20 }
  0x3b   :  { %2295 = vmatpush3.bf16.msra.mxu1 %v2544_v22  ;;  %v2111_v22 = vld [vmem:[%s3361_s0 + $0x20] sm:$0xff]  }
  0x3c   :  { %2296 = vmatprep.subr.bf16.mxu1 %v2545_v23 }
  0x3f   :  { %2297 = vmatpush3.bf16.msra.mxu1 %v2545_v23 }
  0xf5   :  { %v2268_v30 = vpop.f32.mrb[0].mxu1 }
  0xf6   :  { %v269_v31 = vadd.f32 %v2268_v30, %v2751_v29  ;;  %v260_v33 = vpop.f32.mrb[1].mxu1 }
  0xf7   :  { %v261_v35 = vadd.f32 %v2751_v29, %v260_v33  ;;  %v2269_v36 = vpop.f32.mrb[2].mxu1  ;;  %v2054_v33 = vunpack.c.l.bf16 %v2111_v22 }
  0xf8   :  { %v272_v38 = vadd.f32 %v2269_v36, %v2751_v29  ;;  %v263_v39 = vpop.f32.mrb[3].mxu1  ;;  %v325_v45 = vmax.f32 %v269_v31, 0.0 }
  0xf9   :  { %v323_v41 = vmax.f32 %v261_v35, 0.0  ;;  %v264_v43 = vadd.f32 %v2751_v29, %v263_v39  ;;  %v2055_v35 = vunpack.c.h.bf16 %v2111_v22  ;;  %v2551_v22 = vld [vmem:[%s3358_s2 + $0xa8] sm:$0xff]  }
  0xfa   :  { %v326_v46 = vmax.f32 %v272_v38, 0.0  ;;  %v2769_v52 = vadd.f32 %v2042_v44, %v325_v45  ;;  %2324 = vmatprep.subr.bf16.mxu0 %v2551_v22 }
  0xfb   :  { %v324_v47 = vmax.f32 %v264_v43, 0.0  ;;  %v2765_v49 = vadd.f32 %v2038_v40, %v323_v41  ;;  %2325 = vmatpush3.bf16.msra.mxu0 %v2551_v22 }
  0xfc   :  { %v2763_v48 = vadd.f32 %v2043_v37, %v326_v46  ;;  %v2058_v37 = vunpack.c.l.bf16 %v2112_v24  ;;  %v2553_v24 = vld [vmem:[%s3358_s2 + $0xb8] sm:$0xff]  }
  0xfd   :  { %v2767_v50 = vadd.f32 %v2039_v42, %v324_v47  ;;  %v2272_v51 = vpop.f32.mrb[4].mxu1  ;;  %v2113_v47 = vld [vmem:[%s3361_s0 + $0x30] sm:$0xff]  }
  0xfe   :  { %v285_v53 = vadd.f32 %v2272_v51, %v2751_v29  ;;  %v276_v55 = vpop.f32.mrb[5].mxu1  ;;  %v356_v60 = vpack.c.bf16 %v2763_v48, %v2769_v52 }
  0xff   :  { %v277_v57 = vadd.f32 %v2751_v29, %v276_v55  ;;  %v2273_v58 = vpop.f32.mrb[6].mxu1  ;;  %v355_v59 = vpack.c.bf16 %v2767_v50, %v2765_v49 }
 0x100   :  { %v288_v62 = vadd.f32 %v2273_v58, %v2751_v29  ;;  %v279_v63 = vpop.f32.mrb[7].mxu1  ;;  %v329_v6 = vmax.f32 %v285_v53, 0.0  ;;  %v2114_v53 = vld [vmem:[%s3361_s0 + $0x38] sm:$0xff]  }
 0x101   :  { %v327_v1 = vmax.f32 %v277_v57, 0.0  ;;  %v280_v3 = vadd.f32 %v2751_v29, %v279_v63  ;;  %2298 = vmatprep.mubr.bf16.mxu1 %v355_v59  ;;  %v2067_v57 = vunpack.c.h.bf16 %v2114_v53  ;;  %v2063_v63 = vunpack.c.h.bf16 %v2113_v47 }
 0x102   :  { %v330_v7 = vmax.f32 %v288_v62, 0.0  ;;  %2299 = vmatmul.mubr.bf16.vlgmr.msra.gmra.mrb[16].mxu1 %v356_v60  ;;  %v2791_v19 = vadd.f32 %v2050_v5, %v329_v6 }
 0x103   :  { %v328_v8 = vmax.f32 %v280_v3, 0.0  ;;  %v2787_v12 = vadd.f32 %v2046_v0, %v327_v1  ;;  %v2066_v1 = vunpack.c.l.bf16 %v2114_v53 }
 0x104   :  { %v2785_v11 = vadd.f32 %v2051_v61, %v330_v7  ;;  %v2062_v61 = vunpack.c.l.bf16 %v2113_v47 }
 0x105   :  { %v2789_v15 = vadd.f32 %v2047_v2, %v328_v8  ;;  %v2276_v16 = vpop.f32.mrb[8].mxu1 }
 0x106   :  { %v301_v21 = vadd.f32 %v2276_v16, %v2751_v29  ;;  %v292_v23 = vpop.f32.mrb[9].mxu1  ;;  %v358_v32 = vpack.c.bf16 %v2785_v11, %v2791_v19 }
 0x107   :  { %v293_v25 = vadd.f32 %v2751_v29, %v292_v23  ;;  %v2277_v26 = vpop.f32.mrb[10].mxu1  ;;  %v357_v27 = vpack.c.bf16 %v2789_v15, %v2787_v12  ;;  %v2552_v23 = vld [vmem:[%s3358_s2 + $0xb0] sm:$0xff]  }
 0x108   :  { %v304_v30 = vadd.f32 %v2277_v26, %v2751_v29  ;;  %v295_v31 = vpop.f32.mrb[11].mxu1  ;;  %v333_v38 = vmax.f32 %v301_v21, 0.0  ;;  %2326 = vmatprep.subr.bf16.mxu0 %v2552_v23  ;;  %v2555_v26 = vld [vmem:[%s3358_s2 + $0xc8] sm:$0xff]  }
 0x109   :  { %v331_v34 = vmax.f32 %v293_v25, 0.0  ;;  %v296_v36 = vadd.f32 %v2751_v29, %v295_v31  ;;  %2302 = vmatprep.mubr.bf16.mxu1 %v357_v27  ;;  %2327 = vmatpush3.bf16.msra.mxu0 %v2552_v23  ;;  %v2554_v25 = vld [vmem:[%s3358_s2 + $0xc0] sm:$0xff]   ;;  %v2556_v27 = vld [vmem:[%s3358_s2 + $0xd0] sm:$0xff]   ;;  %v78_v23 = vunpack.c.l.bf16 %v2686_v13 }
 0x10a   :  { %v334_v39 = vmax.f32 %v304_v30, 0.0  ;;  %2303 = vmatmul.mubr.bf16.gmra.mrb[20].mxu1 %v358_v32  ;;  %v2813_v45 = vadd.f32 %v2058_v37, %v333_v38  ;;  %2328 = vmatprep.subr.bf16.mxu0 %v2553_v24  ;;  %v2558_v30 = vld [vmem:[%s3358_s2 + $0xe0] sm:$0xff]   ;;  %v75_v38 = vunpack.c.h.bf16 %v2670_v9 }
 0x10b   :  { %v332_v40 = vmax.f32 %v296_v36, 0.0  ;;  %v2809_v42 = vadd.f32 %v2054_v33, %v331_v34  ;;  %2346 = vmatprep.subr.bf16.mxu1 %v2554_v25  ;;  %v2868_v31 = vld [vmem:[%s3360_s3 + $0x1] ss:$0 sm:$0xff] }
 0x10c   :  { %v2807_v41 = vadd.f32 %v2059_v28, %v334_v39  ;;  %2347 = vmatpush3.bf16.msra.mxu1 %v2554_v25  ;;  %v2557_v28 = vld [vmem:[%s3358_s2 + $0xd8] sm:$0xff]  }
 0x10d   :  { %v2811_v43 = vadd.f32 %v2055_v35, %v332_v40  ;;  %v2280_v44 = vpop.f32.mrb[12].mxu1  ;;  %2329 = vmatpush3.bf16.msra.mxu0 %v2553_v24  ;;  %2348 = vmatprep.subr.bf16.mxu1 %v2555_v26  ;;  %v72_v35 = vunpack.c.l.bf16 %v2652_v4 }
 0x10e   :  { %v317_v46 = vadd.f32 %v2280_v44, %v2751_v29  ;;  %v308_v51 = vpop.f32.mrb[13].mxu1  ;;  %v360_v60 = vpack.c.bf16 %v2807_v41, %v2813_v45  ;;  %v73_v44 = vunpack.c.h.bf16 %v2652_v4 }
 0x10f   :  { %v309_v54 = vadd.f32 %v2751_v29, %v308_v51  ;;  %v2281_v55 = vpop.f32.mrb[14].mxu1  ;;  %v359_v56 = vpack.c.bf16 %v2811_v43, %v2809_v42  ;;  %v74_v51 = vunpack.c.l.bf16 %v2670_v9 }
 0x110   :  { %v320_v58 = vadd.f32 %v2281_v55, %v2751_v29  ;;  %v311_v59 = vpop.f32.mrb[15].mxu1  ;;  %v337_v2 = vmax.f32 %v317_v46, 0.0  ;;  %2349 = vmatpush3.bf16.msra.mxu1 %v2555_v26 }
 0x111   :  { %v335_v62 = vmax.f32 %v309_v54, 0.0  ;;  %v312_v0 = vadd.f32 %v2751_v29, %v311_v59  ;;  %2306 = vmatprep.mubr.bf16.mxu1 %v359_v56  ;;  %2350 = vmatprep.subr.bf16.mxu1 %v2556_v27 }
 0x112   :  { %v338_v3 = vmax.f32 %v320_v58, 0.0  ;;  %2307 = vmatmul.mubr.bf16.gmra.mrb[24].mxu1 %v360_v60  ;;  %v2835_v16 = vadd.f32 %v2066_v1, %v337_v2 }
 0x113   :  { %v336_v5 = vmax.f32 %v312_v0, 0.0  ;;  %v2831_v7 = vadd.f32 %v2062_v61, %v335_v62  ;;  %v79_v0 = vunpack.c.h.bf16 %v2686_v13 }
 0x114   :  { %v2829_v6 = vadd.f32 %v2067_v57, %v338_v3  ;;  %2351 = vmatpush3.bf16.msra.mxu1 %v2556_v27 }
 0x115   :  { %v2833_v8 = vadd.f32 %v2063_v63, %v336_v5  ;;  %2352 = vmatprep.subr.bf16.mxu1 %v2557_v28  ;;  %v76_v5 = vunpack.c.l.bf16 %v2675_v10 }
 0x116   :  { %v362_v29 = vpack.c.bf16 %v2829_v6, %v2835_v16 }
 0x117   :  { %v361_v21 = vpack.c.bf16 %v2833_v8, %v2831_v7 }
 0x118   :  { %2353 = vmatpush3.bf16.msra.mxu1 %v2557_v28 }
 0x119   :  { %2310 = vmatprep.mubr.bf16.mxu1 %v361_v21  ;;  %2354 = vmatprep.subr.bf16.mxu1 %v2558_v30 }
 0x11a   :  { %2311 = vmatmul.mubr.bf16.gmra.mrb[28].mxu1 %v362_v29  ;;  %v77_v29 = vunpack.c.h.bf16 %v2675_v10 }
 0x11c   :  { %2355 = vmatpush3.bf16.msra.mxu1 %v2558_v30 }
 0x1d5   :  { %v2300_v32 = vpop.f32.mrb[16].mxu1 }
 0x1d6   :  { %v460_v33 = vadd.f32 %v2300_v32, %v2868_v31  ;;  %v451_v34 = vpop.f32.mrb[17].mxu1 }
 0x1d7   :  { %v452_v36 = vadd.f32 %v2868_v31, %v451_v34  ;;  %v2301_v37 = vpop.f32.mrb[18].mxu1 }
 0x1d8   :  { %v463_v39 = vadd.f32 %v2301_v37, %v2868_v31  ;;  %v454_v40 = vpop.f32.mrb[19].mxu1  ;;  %v516_v53 = vmax.f32 %v460_v33, 0.0  ;;  %v83_v37 = vunpack.c.h.bf16 %v2706_v17 }
 0x1d9   :  { %v514_v46 = vmax.f32 %v452_v36, 0.0  ;;  %v455_v47 = vadd.f32 %v2868_v31, %v454_v40 }
 0x1da   :  { %v517_v54 = vmax.f32 %v463_v39, 0.0  ;;  %v2884_v60 = vadd.f32 %v516_v53, %v74_v51  ;;  %v82_v53 = vunpack.c.l.bf16 %v2706_v17 }
 0x1db   :  { %v515_v55 = vmax.f32 %v455_v47, 0.0  ;;  %v2878_v56 = vadd.f32 %v514_v46, %v72_v35  ;;  %v81_v47 = vunpack.c.h.bf16 %v2692_v14 }
 0x1dc   :  { %v2880_v57 = vadd.f32 %v517_v54, %v75_v38 }
 0x1dd   :  { %v2304_v58 = vpop.f32.mrb[20].mxu1  ;;  %v2882_v59 = vadd.f32 %v515_v55, %v73_v44  ;;  %v80_v44 = vunpack.c.l.bf16 %v2692_v14 }
 0x1de   :  { %v476_v61 = vadd.f32 %v2304_v58, %v2868_v31  ;;  %v467_v4 = vpop.f32.mrb[21].mxu1  ;;  %v585_v3 = vpack.c.bf16 %v2880_v57, %v2884_v60 }
 0x1df   :  { %v468_v62 = vadd.f32 %v2868_v31, %v467_v4  ;;  %v2305_v63 = vpop.f32.mrb[22].mxu1  ;;  %v584_v9 = vpack.c.bf16 %v2882_v59, %v2878_v56 }
 0x1e0   :  { %v479_v1 = vadd.f32 %v2305_v63, %v2868_v31  ;;  %v470_v2 = vpop.f32.mrb[23].mxu1  ;;  %v520_v24 = vmax.f32 %v476_v61, 0.0 }
 0x1e1   :  { %v518_v21 = vmax.f32 %v468_v62, 0.0  ;;  %v471_v22 = vadd.f32 %v2868_v31, %v470_v2  ;;  %2330 = vmatprep.mubr.bf16.mxu0 %v584_v9 }
 0x1e2   :  { %v521_v25 = vmax.f32 %v479_v1, 0.0  ;;  %2331 = vmatmul.mubr.bf16.vlgmr.msra.gmra.mrb[0].mxu0 %v585_v3  ;;  %v2904_v33 = vadd.f32 %v520_v24, %v78_v23  ;;  %v87_v3 = vunpack.c.h.bf16 %v2721_v20  ;;  %v85_v24 = vunpack.c.h.bf16 %v2711_v18 }
 0x1e3   :  { %v519_v26 = vmax.f32 %v471_v22, 0.0  ;;  %v2900_v28 = vadd.f32 %v518_v21, %v76_v5  ;;  %v84_v22 = vunpack.c.l.bf16 %v2711_v18 }
 0x1e4   :  { %v2898_v27 = vadd.f32 %v521_v25, %v79_v0 }
 0x1e5   :  { %v2902_v30 = vadd.f32 %v519_v26, %v77_v29  ;;  %v2308_v32 = vpop.f32.mrb[24].mxu1  ;;  %v86_v26 = vunpack.c.l.bf16 %v2721_v20  ;;  %v2559_v20 = vld [vmem:[%s3358_s2 + $0xe8] sm:$0xff]  }
 0x1e6   :  { %v492_v10 = vadd.f32 %v2308_v32, %v2868_v31  ;;  %v483_v34 = vpop.f32.mrb[25].mxu1  ;;  %v587_v40 = vpack.c.bf16 %v2898_v27, %v2904_v33  ;;  %2356 = vmatprep.subr.bf16.mxu1 %v2559_v20 }
 0x1e7   :  { %v484_v35 = vadd.f32 %v2868_v31, %v483_v34  ;;  %v2309_v36 = vpop.f32.mrb[26].mxu1  ;;  %v586_v13 = vpack.c.bf16 %v2902_v30, %v2900_v28  ;;  %2357 = vmatpush3.bf16.msra.mxu1 %v2559_v20 }
 0x1e8   :  { %v495_v38 = vadd.f32 %v2309_v36, %v2868_v31  ;;  %v486_v39 = vpop.f32.mrb[27].mxu1  ;;  %v524_v54 = vmax.f32 %v492_v10, 0.0 }
 0x1e9   :  { %v522_v46 = vmax.f32 %v484_v35, 0.0  ;;  %v487_v51 = vadd.f32 %v2868_v31, %v486_v39  ;;  %2334 = vmatprep.mubr.bf16.mxu0 %v586_v13  ;;  %v2561_v39 = vld [vmem:[%s3358_s2 + $0xf8] sm:$0xff]  }
 0x1ea   :  { %v525_v55 = vmax.f32 %v495_v38, 0.0  ;;  %2335 = vmatmul.mubr.bf16.gmra.mrb[4].mxu0 %v587_v40  ;;  %v2924_v9 = vadd.f32 %v524_v54, %v82_v53  ;;  %v2560_v38 = vld [vmem:[%s3358_s2 + $0xf0] sm:$0xff]   ;;  %v2562_v40 = vld [vmem:[%s3358_s2 + $0x100] sm:$0xff]  }
 0x1eb   :  { %v523_v58 = vmax.f32 %v487_v51, 0.0  ;;  %v2920_v4 = vadd.f32 %v522_v46, %v80_v44  ;;  %2358 = vmatprep.subr.bf16.mxu1 %v2560_v38  ;;  %v2563_v44 = vld [vmem:[%s3358_s2 + $0x108] sm:$0xff]   ;;  %2378 = vmatprep.subr.bf16.mxu0 %v2562_v40  ;;  %v2564_v46 = vld [vmem:[%s3358_s2 + $0x110] sm:$0xff]   ;;  %v2566_v51 = vld [vmem:[%s3358_s2 + $0x120] sm:$0xff]  }
 0x1ec   :  { %v2918_v61 = vadd.f32 %v525_v55, %v83_v37  ;;  %2359 = vmatpush3.bf16.msra.mxu1 %v2560_v38  ;;  %2379 = vmatpush3.bf16.msra.mxu0 %v2562_v40  ;;  %v2977_v53 = vld [vmem:[%s3360_s3 + $0x2] ss:$0 sm:$0xff] }
 0x1ed   :  { %v2922_v62 = vadd.f32 %v523_v58, %v81_v47  ;;  %v2312_v63 = vpop.f32.mrb[28].mxu1  ;;  %2360 = vmatprep.subr.bf16.mxu1 %v2561_v39  ;;  %2380 = vmatprep.subr.bf16.mxu0 %v2563_v44  ;;  %v2565_v47 = vld [vmem:[%s3358_s2 + $0x118] sm:$0xff]  }
 0x1ee   :  { %v508_v14 = vadd.f32 %v2312_v63, %v2868_v31  ;;  %v499_v0 = vpop.f32.mrb[29].mxu1  ;;  %v589_v29 = vpack.c.bf16 %v2918_v61, %v2924_v9 }
 0x1ef   :  { %v500_v1 = vadd.f32 %v2868_v31, %v499_v0  ;;  %v2313_v2 = vpop.f32.mrb[30].mxu1  ;;  %v588_v17 = vpack.c.bf16 %v2922_v62, %v2920_v4 }
 0x1f0   :  { %v511_v5 = vadd.f32 %v2313_v2, %v2868_v31  ;;  %v502_v21 = vpop.f32.mrb[31].mxu1  ;;  %v528_v32 = vmax.f32 %v508_v14, 0.0  ;;  %2361 = vmatpush3.bf16.msra.mxu1 %v2561_v39  ;;  %2381 = vmatpush3.bf16.msra.mxu0 %v2563_v44 }
 0x1f1   :  { %v526_v23 = vmax.f32 %v500_v1, 0.0  ;;  %v503_v25 = vadd.f32 %v2868_v31, %v502_v21  ;;  %2338 = vmatprep.mubr.bf16.mxu0 %v588_v17  ;;  %2382 = vmatprep.subr.bf16.mxu0 %v2564_v46 }
 0x1f2   :  { %v529_v10 = vmax.f32 %v511_v5, 0.0  ;;  %2339 = vmatmul.mubr.bf16.gmra.mrb[8].mxu0 %v589_v29  ;;  %v2944_v37 = vadd.f32 %v528_v32, %v86_v26 }
 0x1f3   :  { %v527_v34 = vmax.f32 %v503_v25, 0.0  ;;  %v2940_v36 = vadd.f32 %v526_v23, %v84_v22 }
 0x1f4   :  { %v2938_v35 = vadd.f32 %v529_v10, %v87_v3  ;;  %2383 = vmatpush3.bf16.msra.mxu0 %v2564_v46 }
 0x1f5   :  { %v2942_v13 = vadd.f32 %v527_v34, %v85_v24  ;;  %2384 = vmatprep.subr.bf16.mxu0 %v2565_v47 }
 0x1f6   :  { %v591_v31 = vpack.c.bf16 %v2938_v35, %v2944_v37 }
 0x1f7   :  { %v590_v18 = vpack.c.bf16 %v2942_v13, %v2940_v36 }
 0x1f8   :  { %2385 = vmatpush3.bf16.msra.mxu0 %v2565_v47 }
 0x1f9   :  { %2342 = vmatprep.mubr.bf16.mxu0 %v590_v18  ;;  %2386 = vmatprep.subr.bf16.mxu0 %v2566_v51 }
 0x1fa   :  { %2343 = vmatmul.mubr.bf16.gmra.mrb[12].mxu0 %v591_v31 }
 0x1fc   :  { %2387 = vmatpush3.bf16.msra.mxu0 %v2566_v51 }
 0x2b5   :  { %v2332_v54 = vpop.f32.mrb[0].mxu0 }
 0x2b6   :  { %v689_v55 = vadd.f32 %v2332_v54, %v2977_v53  ;;  %v680_v58 = vpop.f32.mrb[1].mxu0 }
 0x2b7   :  { %v681_v63 = vadd.f32 %v2977_v53, %v680_v58  ;;  %v2333_v14 = vpop.f32.mrb[2].mxu0 }
 0x2b8   :  { %v692_v0 = vadd.f32 %v2333_v14, %v2977_v53  ;;  %v683_v1 = vpop.f32.mrb[3].mxu0  ;;  %v745_v3 = vmax.f32 %v689_v55, 0.0 }
 0x2b9   :  { %v743_v2 = vmax.f32 %v681_v63, 0.0  ;;  %v684_v17 = vadd.f32 %v2977_v53, %v683_v1 }
 0x2ba   :  { %v746_v5 = vmax.f32 %v692_v0, 0.0  ;;  %v2993_v25 = vadd.f32 %v745_v3, %v2769_v52 }
 0x2bb   :  { %v744_v21 = vmax.f32 %v684_v17, 0.0  ;;  %v2987_v22 = vadd.f32 %v743_v2, %v2765_v49 }
 0x2bc   :  { %v2984_v29 = vadd.f32 %v746_v5, %v2763_v48 }
 0x2bd   :  { %v2990_v23 = vadd.f32 %v744_v21, %v2767_v50  ;;  %v2336_v24 = vpop.f32.mrb[4].mxu0 }
 0x2be   :  { %v705_v26 = vadd.f32 %v2336_v24, %v2977_v53  ;;  %v696_v32 = vpop.f32.mrb[5].mxu0  ;;  %v776_v49 = vpack.c.bf16 %v2984_v29, %v2993_v25 }
 0x2bf   :  { %v697_v10 = vadd.f32 %v2977_v53, %v696_v32  ;;  %v2337_v34 = vpop.f32.mrb[6].mxu0  ;;  %v775_v48 = vpack.c.bf16 %v2990_v23, %v2987_v22 }
 0x2c0   :  { %v708_v18 = vadd.f32 %v2337_v34, %v2977_v53  ;;  %v699_v50 = vpop.f32.mrb[7].mxu0  ;;  %v749_v52 = vmax.f32 %v705_v26, 0.0 }
 0x2c1   :  { %v747_v31 = vmax.f32 %v697_v10, 0.0  ;;  %v700_v20 = vadd.f32 %v2977_v53, %v699_v50  ;;  %2362 = vmatprep.mubr.bf16.mxu1 %v775_v48 }
 0x2c2   :  { %v750_v38 = vmax.f32 %v708_v18, 0.0  ;;  %2363 = vmatmul.mubr.bf16.vlgmr.msra.gmra.mrb[32].mxu1 %v776_v49  ;;  %v3013_v51 = vadd.f32 %v749_v52, %v2791_v19 }
 0x2c3   :  { %v748_v39 = vmax.f32 %v700_v20, 0.0  ;;  %v3007_v44 = vadd.f32 %v747_v31, %v2787_v12 }
 0x2c4   :  { %v3004_v40 = vadd.f32 %v750_v38, %v2785_v11 }
 0x2c5   :  { %v3010_v46 = vadd.f32 %v748_v39, %v2789_v15  ;;  %v2340_v47 = vpop.f32.mrb[8].mxu0 }
 0x2c6   :  { %v721_v54 = vadd.f32 %v2340_v47, %v2977_v53  ;;  %v712_v55 = vpop.f32.mrb[9].mxu0  ;;  %v778_v15 = vpack.c.bf16 %v3004_v40, %v3013_v51 }
 0x2c7   :  { %v713_v58 = vadd.f32 %v2977_v53, %v712_v55  ;;  %v2341_v63 = vpop.f32.mrb[10].mxu0  ;;  %v777_v11 = vpack.c.bf16 %v3010_v46, %v3007_v44  ;;  %v2571_v55 = vld [vmem:[%s3358_s2 + $0x148] sm:$0xff]  }
 0x2c8   :  { %v724_v14 = vadd.f32 %v2341_v63, %v2977_v53  ;;  %v715_v12 = vpop.f32.mrb[11].mxu0  ;;  %v753_v19 = vmax.f32 %v721_v54, 0.0  ;;  %v2573_v63 = vld [vmem:[%s3358_s2 + $0x158] sm:$0xff]  }
 0x2c9   :  { %v751_v0 = vmax.f32 %v713_v58, 0.0  ;;  %v716_v1 = vadd.f32 %v2977_v53, %v715_v12  ;;  %2366 = vmatprep.mubr.bf16.mxu1 %v777_v11  ;;  %v2572_v58 = vld [vmem:[%s3358_s2 + $0x150] sm:$0xff]   ;;  %v2574_v11 = vld [vmem:[%s3358_s2 + $0x160] sm:$0xff]  }
 0x2ca   :  { %v754_v2 = vmax.f32 %v724_v14, 0.0  ;;  %2367 = vmatmul.mubr.bf16.gmra.mrb[36].mxu1 %v778_v15  ;;  %v3033_v26 = vadd.f32 %v753_v19, %v2813_v45  ;;  %v3086_v14 = vld [vmem:[%s3360_s3 + $0x3] ss:$0 sm:$0xff] }
 0x2cb   :  { %v752_v17 = vmax.f32 %v716_v1, 0.0  ;;  %v3027_v5 = vadd.f32 %v751_v0, %v2809_v42 }
 0x2cc   :  { %v3024_v3 = vadd.f32 %v754_v2, %v2807_v41 }
 0x2cd   :  { %v3030_v21 = vadd.f32 %v752_v17, %v2811_v43  ;;  %v2344_v24 = vpop.f32.mrb[12].mxu0 }
 0x2ce   :  { %v737_v32 = vadd.f32 %v2344_v24, %v2977_v53  ;;  %v728_v10 = vpop.f32.mrb[13].mxu0  ;;  %v780_v43 = vpack.c.bf16 %v3024_v3, %v3033_v26 }
 0x2cf   :  { %v729_v34 = vadd.f32 %v2977_v53, %v728_v10  ;;  %v2345_v48 = vpop.f32.mrb[14].mxu0  ;;  %v779_v41 = vpack.c.bf16 %v3030_v21, %v3027_v5 }
 0x2d0   :  { %v740_v49 = vadd.f32 %v2345_v48, %v2977_v53  ;;  %v731_v42 = vpop.f32.mrb[15].mxu0  ;;  %v757_v45 = vmax.f32 %v737_v32, 0.0 }
 0x2d1   :  { %v755_v18 = vmax.f32 %v729_v34, 0.0  ;;  %v732_v50 = vadd.f32 %v2977_v53, %v731_v42  ;;  %2370 = vmatprep.mubr.bf16.mxu1 %v779_v41 }
 0x2d2   :  { %v758_v31 = vmax.f32 %v740_v49, 0.0  ;;  %2371 = vmatmul.mubr.bf16.gmra.mrb[40].mxu1 %v780_v43  ;;  %v3053_v47 = vadd.f32 %v757_v45, %v2835_v16  ;;  %v2570_v16 = vld [vmem:[%s3358_s2 + $0x140] sm:$0xff]  }
 0x2d3   :  { %v756_v20 = vmax.f32 %v732_v50, 0.0  ;;  %v3047_v38 = vadd.f32 %v755_v18, %v2831_v7  ;;  %v2568_v7 = vld [vmem:[%s3358_s2 + $0x130] sm:$0xff]   ;;  %2410 = vmatprep.subr.bf16.mxu1 %v2570_v16 }
 0x2d4   :  { %v3044_v52 = vadd.f32 %v758_v31, %v2829_v6  ;;  %v2567_v6 = vld [vmem:[%s3358_s2 + $0x128] sm:$0xff]   ;;  %2411 = vmatpush3.bf16.msra.mxu1 %v2570_v16 }
 0x2d5   :  { %v3050_v39 = vadd.f32 %v756_v20, %v2833_v8  ;;  %2388 = vmatprep.subr.bf16.mxu0 %v2567_v6  ;;  %v2569_v8 = vld [vmem:[%s3358_s2 + $0x138] sm:$0xff]   ;;  %2412 = vmatprep.subr.bf16.mxu1 %v2571_v55 }
 0x2d6   :  { %v782_v54 = vpack.c.bf16 %v3044_v52, %v3053_v47  ;;  %2389 = vmatpush3.bf16.msra.mxu0 %v2567_v6 }
 0x2d7   :  { %v781_v53 = vpack.c.bf16 %v3050_v39, %v3047_v38  ;;  %2390 = vmatprep.subr.bf16.mxu0 %v2568_v7 }
 0x2d8   :  { %2413 = vmatpush3.bf16.msra.mxu1 %v2571_v55 }
 0x2d9   :  { %2374 = vmatprep.mubr.bf16.mxu1 %v781_v53  ;;  %2414 = vmatprep.subr.bf16.mxu1 %v2572_v58 }
 0x2da   :  { %2375 = vmatmul.mubr.bf16.gmra.mrb[44].mxu1 %v782_v54  ;;  %2391 = vmatpush3.bf16.msra.mxu0 %v2568_v7 }
 0x2db   :  { %2392 = vmatprep.subr.bf16.mxu0 %v2569_v8 }
 0x2dc   :  { %2415 = vmatpush3.bf16.msra.mxu1 %v2572_v58 }
 0x2dd   :  { %2416 = vmatprep.subr.bf16.mxu1 %v2573_v63 }
 0x2de   :  { %2393 = vmatpush3.bf16.msra.mxu0 %v2569_v8 }
 0x2e0   :  { %2417 = vmatpush3.bf16.msra.mxu1 %v2573_v63 }
 0x2e1   :  { %2418 = vmatprep.subr.bf16.mxu1 %v2574_v11 }
 0x2e4   :  { %2419 = vmatpush3.bf16.msra.mxu1 %v2574_v11 }
 0x395   :  { %v2364_v12 = vpop.f32.mrb[32].mxu1 }
 0x396   :  { %v880_v15 = vadd.f32 %v2364_v12, %v3086_v14  ;;  %v871_v0 = vpop.f32.mrb[33].mxu1 }
 0x397   :  { %v872_v1 = vadd.f32 %v3086_v14, %v871_v0  ;;  %v2365_v19 = vpop.f32.mrb[34].mxu1 }
 0x398   :  { %v883_v2 = vadd.f32 %v2365_v19, %v3086_v14  ;;  %v874_v17 = vpop.f32.mrb[35].mxu1  ;;  %v936_v10 = vmax.f32 %v880_v15, 0.0 }
 0x399   :  { %v934_v24 = vmax.f32 %v872_v1, 0.0  ;;  %v875_v32 = vadd.f32 %v3086_v14, %v874_v17 }
 0x39a   :  { %v937_v34 = vmax.f32 %v883_v2, 0.0  ;;  %v3102_v18 = vadd.f32 %v936_v10, %v2884_v60 }
 0x39b   :  { %v935_v48 = vmax.f32 %v875_v32, 0.0  ;;  %v3096_v49 = vadd.f32 %v934_v24, %v2878_v56 }
 0x39c   :  { %v3093_v41 = vadd.f32 %v937_v34, %v2880_v57 }
 0x39d   :  { %v3099_v42 = vadd.f32 %v935_v48, %v2882_v59  ;;  %v2368_v43 = vpop.f32.mrb[36].mxu1 }
 0x39e   :  { %v896_v50 = vadd.f32 %v2368_v43, %v3086_v14  ;;  %v887_v45 = vpop.f32.mrb[37].mxu1  ;;  %v1005_v56 = vpack.c.bf16 %v3093_v41, %v3102_v18 }
 0x39f   :  { %v888_v31 = vadd.f32 %v3086_v14, %v887_v45  ;;  %v2369_v20 = vpop.f32.mrb[38].mxu1  ;;  %v1004_v57 = vpack.c.bf16 %v3099_v42, %v3096_v49 }
 0x3a0   :  { %v899_v53 = vadd.f32 %v2369_v20, %v3086_v14  ;;  %v890_v59 = vpop.f32.mrb[39].mxu1  ;;  %v940_v60 = vmax.f32 %v896_v50, 0.0 }
 0x3a1   :  { %v938_v54 = vmax.f32 %v888_v31, 0.0  ;;  %v891_v6 = vadd.f32 %v3086_v14, %v890_v59  ;;  %2394 = vmatprep.mubr.bf16.mxu0 %v1004_v57 }
 0x3a2   :  { %v941_v7 = vmax.f32 %v899_v53, 0.0  ;;  %2395 = vmatmul.mubr.bf16.vlgmr.msra.gmra.mrb[16].mxu0 %v1005_v56  ;;  %v3122_v11 = vadd.f32 %v940_v60, %v2904_v33 }
 0x3a3   :  { %v939_v8 = vmax.f32 %v891_v6, 0.0  ;;  %v3116_v55 = vadd.f32 %v938_v54, %v2900_v28 }
 0x3a4   :  { %v3113_v16 = vadd.f32 %v941_v7, %v2898_v27 }
 0x3a5   :  { %v3119_v58 = vadd.f32 %v939_v8, %v2902_v30  ;;  %v2372_v63 = vpop.f32.mrb[40].mxu1 }
 0x3a6   :  { %v912_v12 = vadd.f32 %v2372_v63, %v3086_v14  ;;  %v903_v15 = vpop.f32.mrb[41].mxu1  ;;  %v1007_v30 = vpack.c.bf16 %v3113_v16, %v3122_v11 }
 0x3a7   :  { %v904_v0 = vadd.f32 %v3086_v14, %v903_v15  ;;  %v2373_v1 = vpop.f32.mrb[42].mxu1  ;;  %v1006_v27 = vpack.c.bf16 %v3119_v58, %v3116_v55  ;;  %v2579_v15 = vld [vmem:[%s3362_s4 + $0x48] sm:$0xff]  }
 0x3a8   :  { %v915_v19 = vadd.f32 %v2373_v1, %v3086_v14  ;;  %v906_v28 = vpop.f32.mrb[43].mxu1  ;;  %v944_v33 = vmax.f32 %v912_v12, 0.0  ;;  %v2581_v1 = vld [vmem:[%s3362_s4 + $0x58] sm:$0xff]  }
 0x3a9   :  { %v942_v2 = vmax.f32 %v904_v0, 0.0  ;;  %v907_v17 = vadd.f32 %v3086_v14, %v906_v28  ;;  %2398 = vmatprep.mubr.bf16.mxu0 %v1006_v27  ;;  %v2580_v0 = vld [vmem:[%s3362_s4 + $0x50] sm:$0xff]   ;;  %v2582_v27 = vld [vmem:[%s3362_s4 + $0x60] sm:$0xff]  }
 0x3aa   :  { %v945_v24 = vmax.f32 %v915_v19, 0.0  ;;  %2399 = vmatmul.mubr.bf16.gmra.mrb[20].mxu0 %v1007_v30  ;;  %v3142_v50 = vadd.f32 %v944_v33, %v2924_v9  ;;  %v3195_v19 = vld [vmem:[%s3360_s3 + $0x4] ss:$0 sm:$0xff] }
 0x3ab   :  { %v943_v32 = vmax.f32 %v907_v17, 0.0  ;;  %v3136_v34 = vadd.f32 %v942_v2, %v2920_v4 }
 0x3ac   :  { %v3133_v10 = vadd.f32 %v945_v24, %v2918_v61 }
 0x3ad   :  { %v3139_v48 = vadd.f32 %v943_v32, %v2922_v62  ;;  %v2376_v43 = vpop.f32.mrb[44].mxu1 }
 0x3ae   :  { %v928_v45 = vadd.f32 %v2376_v43, %v3086_v14  ;;  %v919_v31 = vpop.f32.mrb[45].mxu1  ;;  %v1009_v62 = vpack.c.bf16 %v3133_v10, %v3142_v50 }
 0x3af   :  { %v920_v20 = vadd.f32 %v3086_v14, %v919_v31  ;;  %v2377_v57 = vpop.f32.mrb[46].mxu1  ;;  %v1008_v61 = vpack.c.bf16 %v3139_v48, %v3136_v34 }
 0x3b0   :  { %v931_v56 = vadd.f32 %v2377_v57, %v3086_v14  ;;  %v922_v4 = vpop.f32.mrb[47].mxu1  ;;  %v948_v9 = vmax.f32 %v928_v45, 0.0 }
 0x3b1   :  { %v946_v53 = vmax.f32 %v920_v20, 0.0  ;;  %v923_v59 = vadd.f32 %v3086_v14, %v922_v4  ;;  %2402 = vmatprep.mubr.bf16.mxu0 %v1008_v61 }
 0x3b2   :  { %v949_v54 = vmax.f32 %v931_v56, 0.0  ;;  %2403 = vmatmul.mubr.bf16.gmra.mrb[24].mxu0 %v1009_v62  ;;  %v3162_v63 = vadd.f32 %v948_v9, %v2944_v37  ;;  %v2578_v37 = vld [vmem:[%s3362_s4 + $0x40] sm:$0xff]  }
 0x3b3   :  { %v947_v6 = vmax.f32 %v923_v59, 0.0  ;;  %v3156_v7 = vadd.f32 %v946_v53, %v2940_v36  ;;  %v2576_v36 = vld [vmem:[%s3358_s2 + $0x170] sm:$0xff]   ;;  %2442 = vmatprep.subr.bf16.mxu0 %v2578_v37 }
 0x3b4   :  { %v3153_v60 = vadd.f32 %v949_v54, %v2938_v35  ;;  %v2575_v35 = vld [vmem:[%s3358_s2 + $0x168] sm:$0xff]   ;;  %2443 = vmatpush3.bf16.msra.mxu0 %v2578_v37 }
 0x3b5   :  { %v3159_v8 = vadd.f32 %v947_v6, %v2942_v13  ;;  %2420 = vmatprep.subr.bf16.mxu1 %v2575_v35  ;;  %v2577_v13 = vld [vmem:[%s3358_s2 + $0x178] sm:$0xff]   ;;  %2444 = vmatprep.subr.bf16.mxu0 %v2579_v15 }
 0x3b6   :  { %v1011_v12 = vpack.c.bf16 %v3153_v60, %v3162_v63  ;;  %2421 = vmatpush3.bf16.msra.mxu1 %v2575_v35 }
 0x3b7   :  { %v1010_v14 = vpack.c.bf16 %v3159_v8, %v3156_v7  ;;  %2422 = vmatprep.subr.bf16.mxu1 %v2576_v36 }
 0x3b8   :  { %2445 = vmatpush3.bf16.msra.mxu0 %v2579_v15 }
 0x3b9   :  { %2406 = vmatprep.mubr.bf16.mxu0 %v1010_v14  ;;  %2446 = vmatprep.subr.bf16.mxu0 %v2580_v0 }
 0x3ba   :  { %2407 = vmatmul.mubr.bf16.gmra.mrb[28].mxu0 %v1011_v12  ;;  %2423 = vmatpush3.bf16.msra.mxu1 %v2576_v36 }
 0x3bb   :  { %2424 = vmatprep.subr.bf16.mxu1 %v2577_v13 }
 0x3bc   :  { %2447 = vmatpush3.bf16.msra.mxu0 %v2580_v0 }
 0x3bd   :  { %2448 = vmatprep.subr.bf16.mxu0 %v2581_v1 }
 0x3be   :  { %2425 = vmatpush3.bf16.msra.mxu1 %v2577_v13 }
 0x3c0   :  { %2449 = vmatpush3.bf16.msra.mxu0 %v2581_v1 }
 0x3c1   :  { %2450 = vmatprep.subr.bf16.mxu0 %v2582_v27 }
 0x3c4   :  { %2451 = vmatpush3.bf16.msra.mxu0 %v2582_v27 }
 0x475   :  { %v2396_v28 = vpop.f32.mrb[16].mxu0 }
 0x476   :  { %v1109_v30 = vadd.f32 %v2396_v28, %v3195_v19  ;;  %v1100_v2 = vpop.f32.mrb[17].mxu0 }
 0x477   :  { %v1101_v17 = vadd.f32 %v3195_v19, %v1100_v2  ;;  %v2397_v33 = vpop.f32.mrb[18].mxu0 }
 0x478   :  { %v1165_v24 = vmax.f32 %v1109_v30, 0.0  ;;  %v1112_v32 = vadd.f32 %v2397_v33, %v3195_v19  ;;  %v1103_v43 = vpop.f32.mrb[19].mxu0 }
 0x479   :  { %v1163_v45 = vmax.f32 %v1101_v17, 0.0  ;;  %v1104_v31 = vadd.f32 %v3195_v19, %v1103_v43 }
 0x47a   :  { %v1166_v20 = vmax.f32 %v1112_v32, 0.0  ;;  %v1181_v61 = vadd.f32 %v1165_v24, %v2993_v25 }
 0x47b   :  { %v1164_v57 = vmax.f32 %v1104_v31, 0.0  ;;  %v1179_v4 = vadd.f32 %v1163_v45, %v2987_v22 }
 0x47c   :  { %v1182_v56 = vadd.f32 %v1166_v20, %v2984_v29 }
 0x47d   :  { %v1180_v62 = vadd.f32 %v1164_v57, %v2990_v23  ;;  %v2400_v53 = vpop.f32.mrb[20].mxu0 }
 0x47e   :  { %v3205_v59 = vpack.c.bf16 %v1182_v56, %v1181_v61  ;;  %v1125_v9 = vadd.f32 %v2400_v53, %v3195_v19  ;;  %v1116_v54 = vpop.f32.mrb[21].mxu0 }
 0x47f   :  { %v1117_v6 = vadd.f32 %v3195_v19, %v1116_v54  ;;  %v2401_v14 = vpop.f32.mrb[22].mxu0  ;;  %v3209_v12 = vpack.c.bf16 %v1180_v62, %v1179_v4 }
 0x480   :  { %v1169_v35 = vmax.f32 %v1125_v9, 0.0  ;;  %v1128_v25 = vadd.f32 %v2401_v14, %v3195_v19  ;;  %v1119_v36 = vpop.f32.mrb[23].mxu0 }
 0x481   :  { %v1167_v29 = vmax.f32 %v1117_v6, 0.0  ;;  %v1120_v22 = vadd.f32 %v3195_v19, %v1119_v36  ;;  %2426 = vmatprep.mubr.bf16.mxu1 %v3209_v12 }
 0x482   :  { %v1170_v23 = vmax.f32 %v1128_v25, 0.0  ;;  %2427 = vmatmul.mubr.bf16.vlgmr.msra.gmra.mrb[48].mxu1 %v3205_v59  ;;  %v1185_v37 = vadd.f32 %v1169_v35, %v3013_v51 }
 0x483   :  { %v1168_v13 = vmax.f32 %v1120_v22, 0.0  ;;  %v1183_v0 = vadd.f32 %v1167_v29, %v3007_v44 }
 0x484   :  { %v1186_v15 = vadd.f32 %v1170_v23, %v3004_v40 }
 0x485   :  { %v1184_v1 = vadd.f32 %v1168_v13, %v3010_v46  ;;  %v2404_v27 = vpop.f32.mrb[24].mxu0 }
 0x486   :  { %v1141_v28 = vadd.f32 %v2404_v27, %v3195_v19  ;;  %v1132_v30 = vpop.f32.mrb[25].mxu0  ;;  %v3220_v2 = vpack.c.bf16 %v1186_v15, %v1185_v37 }
 0x487   :  { %v1133_v17 = vadd.f32 %v3195_v19, %v1132_v30  ;;  %v2405_v33 = vpop.f32.mrb[26].mxu0  ;;  %v3223_v24 = vpack.c.bf16 %v1184_v1, %v1183_v0 }
 0x488   :  { %v1173_v32 = vmax.f32 %v1141_v28, 0.0  ;;  %v1144_v51 = vadd.f32 %v2405_v33, %v3195_v19  ;;  %v1135_v43 = vpop.f32.mrb[27].mxu0 }
 0x489   :  { %v1171_v40 = vmax.f32 %v1133_v17, 0.0  ;;  %v1136_v44 = vadd.f32 %v3195_v19, %v1135_v43  ;;  %2430 = vmatprep.mubr.bf16.mxu1 %v3223_v24 }
 0x48a   :  { %v1174_v46 = vmax.f32 %v1144_v51, 0.0  ;;  %2431 = vmatmul.mubr.bf16.gmra.mrb[52].mxu1 %v3220_v2  ;;  %v1189_v31 = vadd.f32 %v1173_v32, %v3033_v26 }
 0x48b   :  { %v1172_v45 = vmax.f32 %v1136_v44, 0.0  ;;  %v1187_v57 = vadd.f32 %v1171_v40, %v3027_v5 }
 0x48c   :  { %v1190_v20 = vadd.f32 %v1174_v46, %v3024_v3 }
 0x48d   :  { %v1188_v61 = vadd.f32 %v1172_v45, %v3030_v21  ;;  %v2408_v56 = vpop.f32.mrb[28].mxu0 }
 0x48e   :  { %v1157_v4 = vadd.f32 %v2408_v56, %v3195_v19  ;;  %v1148_v62 = vpop.f32.mrb[29].mxu0  ;;  %v3234_v53 = vpack.c.bf16 %v1190_v20, %v1189_v31 }
 0x48f   :  { %v1149_v9 = vadd.f32 %v3195_v19, %v1148_v62  ;;  %v2409_v54 = vpop.f32.mrb[30].mxu0  ;;  %v3237_v6 = vpack.c.bf16 %v1188_v61, %v1187_v57 }
 0x490   :  { %v1177_v14 = vmax.f32 %v1157_v4, 0.0  ;;  %v1160_v26 = vadd.f32 %v2409_v54, %v3195_v19  ;;  %v1151_v35 = vpop.f32.mrb[31].mxu0 }
 0x491   :  { %v1175_v3 = vmax.f32 %v1149_v9, 0.0  ;;  %v1152_v5 = vadd.f32 %v3195_v19, %v1151_v35  ;;  %2434 = vmatprep.mubr.bf16.mxu1 %v3237_v6  ;;  %v2583_v19 = vld [vmem:[%s3362_s4 + $0x68] sm:$0xff]  }
 0x492   :  { %v1178_v21 = vmax.f32 %v1160_v26, 0.0  ;;  %2435 = vmatmul.mubr.bf16.gmra.mrb[56].mxu1 %v3234_v53  ;;  %v1193_v36 = vadd.f32 %v1177_v14, %v3053_v47  ;;  %2452 = vmatprep.subr.bf16.mxu0 %v2583_v19  ;;  %v3268_v47 = vld [vmem:[%s3360_s3 + $0x5] ss:$0 sm:$0xff] }
 0x493   :  { %v1176_v25 = vmax.f32 %v1152_v5, 0.0  ;;  %v1191_v22 = vadd.f32 %v1175_v3, %v3047_v38  ;;  %2453 = vmatpush3.bf16.msra.mxu0 %v2583_v19  ;;  %v2585_v38 = vld [vmem:[%s3362_s4 + $0x78] sm:$0xff]  }
 0x494   :  { %v1194_v29 = vadd.f32 %v1178_v21, %v3044_v52  ;;  %v2584_v52 = vld [vmem:[%s3362_s4 + $0x70] sm:$0xff]  }
 0x495   :  { %v1192_v23 = vadd.f32 %v1176_v25, %v3050_v39  ;;  %2454 = vmatprep.subr.bf16.mxu0 %v2584_v52  ;;  %v2586_v39 = vld [vmem:[%s3362_s4] sm:$0xff]   ;;  %v2588_v21 = vld [vmem:[%s3362_s4 + $0x10] sm:$0xff]  }
 0x496   :  { %v3247_v13 = vpack.c.bf16 %v1194_v29, %v1193_v36 }
 0x497   :  { %v3249_v37 = vpack.c.bf16 %v1192_v23, %v1191_v22  ;;  %2455 = vmatpush3.bf16.msra.mxu0 %v2584_v52 }
 0x498   :  { %2456 = vmatprep.subr.bf16.mxu0 %v2585_v38 }
 0x499   :  { %2438 = vmatprep.mubr.bf16.mxu1 %v3249_v37 }
 0x49a   :  { %2439 = vmatmul.mubr.bf16.gmra.mrb[60].mxu1 %v3247_v13 }
 0x49b   :  { %2457 = vmatpush3.bf16.msra.mxu0 %v2585_v38 }
 0x49c   :  { %2474 = vmatprep.subr.bf16.mxu0 %v2586_v39 }
 0x555   :  { %v2428_v15 = vpop.f32.mrb[48].mxu1 }
 0x556   :  { %v1300_v0 = vadd.f32 %v2428_v15, %v3268_v47  ;;  %v1291_v1 = vpop.f32.mrb[49].mxu1 }
 0x557   :  { %v1292_v27 = vadd.f32 %v3268_v47, %v1291_v1  ;;  %v2429_v28 = vpop.f32.mrb[50].mxu1 }
 0x558   :  { %v1356_v30 = vmax.f32 %v1300_v0, 0.0  ;;  %v1303_v17 = vadd.f32 %v2429_v28, %v3268_v47  ;;  %v1294_v33 = vpop.f32.mrb[51].mxu1 }
 0x559   :  { %v1354_v32 = vmax.f32 %v1292_v27, 0.0  ;;  %v1295_v51 = vadd.f32 %v3268_v47, %v1294_v33 }
 0x55a   :  { %v1357_v43 = vmax.f32 %v1303_v17, 0.0  ;;  %v1372_v44 = vadd.f32 %v1356_v30, %v3102_v18  ;;  %v2590_v17 = vld [vmem:[%s3362_s4 + $0x20] sm:$0xff]  }
 0x55b   :  { %v1355_v40 = vmax.f32 %v1295_v51, 0.0  ;;  %v1370_v45 = vadd.f32 %v1354_v32, %v3096_v49 }
 0x55c   :  { %v1373_v46 = vadd.f32 %v1357_v43, %v3093_v41  ;;  %v2587_v41 = vld [vmem:[%s3362_s4 + $0x8] sm:$0xff]  }
 0x55d   :  { %v1371_v31 = vadd.f32 %v1355_v40, %v3099_v42  ;;  %v2432_v20 = vpop.f32.mrb[52].mxu1 }
 0x55e   :  { %v1403_v57 = vpack.c.bf16 %v1373_v46, %v1372_v44  ;;  %v1316_v61 = vadd.f32 %v2432_v20, %v3268_v47  ;;  %v1307_v56 = vpop.f32.mrb[53].mxu1 }
 0x55f   :  { %v1308_v4 = vadd.f32 %v3268_v47, %v1307_v56  ;;  %v2433_v62 = vpop.f32.mrb[54].mxu1  ;;  %v1402_v9 = vpack.c.bf16 %v1371_v31, %v1370_v45 }
 0x560   :  { %v1360_v54 = vmax.f32 %v1316_v61, 0.0  ;;  %v1319_v14 = vadd.f32 %v2433_v62, %v3268_v47  ;;  %v1310_v26 = vpop.f32.mrb[55].mxu1 }
 0x561   :  { %v1358_v49 = vmax.f32 %v1308_v4, 0.0  ;;  %v1311_v42 = vadd.f32 %v3268_v47, %v1310_v26  ;;  %2458 = vmatprep.mubr.bf16.mxu0 %v1402_v9  ;;  %v2592_v9 = vld [vmem:[%s3362_s4 + $0x30] sm:$0xff]  }
 0x562   :  { %v1361_v18 = vmax.f32 %v1319_v14, 0.0  ;;  %2459 = vmatmul.mubr.bf16.vlgmr.msra.gmra.mrb[32].mxu0 %v1403_v57  ;;  %v1376_v3 = vadd.f32 %v1360_v54, %v3122_v11 }
 0x563   :  { %v1359_v35 = vmax.f32 %v1311_v42, 0.0  ;;  %2475 = vmatpush3.bf16.msra.mxu0 %v2586_v39  ;;  %v1374_v25 = vadd.f32 %v1358_v49, %v3116_v55  ;;  %v2589_v55 = vld [vmem:[%s3362_s4 + $0x18] sm:$0xff]  }
 0x564   :  { %v1377_v5 = vadd.f32 %v1361_v18, %v3113_v16  ;;  %2476 = vmatprep.subr.bf16.mxu0 %v2587_v41 }
 0x565   :  { %v1375_v36 = vadd.f32 %v1359_v35, %v3119_v58  ;;  %v2436_v29 = vpop.f32.mrb[56].mxu1 }
 0x566   :  { %v1332_v22 = vadd.f32 %v2436_v29, %v3268_v47  ;;  %v1323_v23 = vpop.f32.mrb[57].mxu1  ;;  %v1405_v19 = vpack.c.bf16 %v1377_v5, %v1376_v3 }
 0x567   :  { %v1324_v52 = vadd.f32 %v3268_v47, %v1323_v23  ;;  %2477 = vmatpush3.bf16.msra.mxu0 %v2587_v41  ;;  %v2437_v11 = vpop.f32.mrb[58].mxu1  ;;  %v1404_v38 = vpack.c.bf16 %v1375_v36, %v1374_v25  ;;  %v2593_v41 = vld [vmem:[%s3362_s4 + $0x38] sm:$0xff]  }
 0x568   :  { %v1364_v16 = vmax.f32 %v1332_v22, 0.0  ;;  %v1335_v39 = vadd.f32 %v2437_v11, %v3268_v47  ;;  %v1326_v15 = vpop.f32.mrb[59].mxu1  ;;  %2478 = vmatprep.subr.bf16.mxu0 %v2588_v21 }
 0x569   :  { %v1362_v58 = vmax.f32 %v1324_v52, 0.0  ;;  %v1327_v0 = vadd.f32 %v3268_v47, %v1326_v15  ;;  %2462 = vmatprep.mubr.bf16.mxu0 %v1404_v38 }
 0x56a   :  { %v1365_v1 = vmax.f32 %v1335_v39, 0.0  ;;  %2463 = vmatmul.mubr.bf16.gmra.mrb[36].mxu0 %v1405_v19  ;;  %v1380_v28 = vadd.f32 %v1364_v16, %v3142_v50 }
 0x56b   :  { %v1363_v27 = vmax.f32 %v1327_v0, 0.0  ;;  %2479 = vmatpush3.bf16.msra.mxu0 %v2588_v21  ;;  %v1378_v33 = vadd.f32 %v1362_v58, %v3136_v34  ;;  %v2591_v34 = vld [vmem:[%s3362_s4 + $0x28] sm:$0xff]  }
 0x56c   :  { %v1381_v30 = vadd.f32 %v1365_v1, %v3133_v10  ;;  %2480 = vmatprep.subr.bf16.mxu0 %v2589_v55 }
 0x56d   :  { %v1379_v32 = vadd.f32 %v1363_v27, %v3139_v48  ;;  %v2440_v51 = vpop.f32.mrb[60].mxu1 }
 0x56e   :  { %v1348_v43 = vadd.f32 %v2440_v51, %v3268_v47  ;;  %v1339_v40 = vpop.f32.mrb[61].mxu1  ;;  %v1407_v44 = vpack.c.bf16 %v1381_v30, %v1380_v28 }
 0x56f   :  { %v1340_v46 = vadd.f32 %v3268_v47, %v1339_v40  ;;  %2481 = vmatpush3.bf16.msra.mxu0 %v2589_v55  ;;  %v2441_v50 = vpop.f32.mrb[62].mxu1  ;;  %v1406_v45 = vpack.c.bf16 %v1379_v32, %v1378_v33 }
 0x570   :  { %v1368_v10 = vmax.f32 %v1348_v43, 0.0  ;;  %v1351_v31 = vadd.f32 %v2441_v50, %v3268_v47  ;;  %v1342_v20 = vpop.f32.mrb[63].mxu1  ;;  %2482 = vmatprep.subr.bf16.mxu0 %v2590_v17 }
 0x571   :  { %v1366_v48 = vmax.f32 %v1340_v46, 0.0  ;;  %v1343_v57 = vadd.f32 %v3268_v47, %v1342_v20  ;;  %2466 = vmatprep.mubr.bf16.mxu0 %v1406_v45 }
 0x572   :  { %v1369_v61 = vmax.f32 %v1351_v31, 0.0  ;;  %2467 = vmatmul.mubr.bf16.gmra.mrb[40].mxu0 %v1407_v44  ;;  %v1384_v4 = vadd.f32 %v1368_v10, %v3162_v63 }
 0x573   :  { %v1367_v56 = vmax.f32 %v1343_v57, 0.0  ;;  %2483 = vmatpush3.bf16.msra.mxu0 %v2590_v17  ;;  %v1382_v54 = vadd.f32 %v1366_v48, %v3156_v7  ;;  %v2003_v7 = vld [vmem:[%s3363_s5] ss:$0 sm:$0xff] }
 0x574   :  { %v1385_v62 = vadd.f32 %v1369_v61, %v3153_v60  ;;  %2484 = vmatprep.subr.bf16.mxu0 %v2591_v34 }
 0x575   :  { %v1383_v14 = vadd.f32 %v1367_v56, %v3159_v8 }
 0x576   :  { %v1409_v26 = vpack.c.bf16 %v1385_v62, %v1384_v4 }
 0x577   :  { %2485 = vmatpush3.bf16.msra.mxu0 %v2591_v34  ;;  %v1408_v47 = vpack.c.bf16 %v1383_v14, %v1382_v54 }
 0x578   :  { %2486 = vmatprep.subr.bf16.mxu0 %v2592_v9 }
 0x579   :  { %2470 = vmatprep.mubr.bf16.mxu0 %v1408_v47 }
 0x57a   :  { %2471 = vmatmul.mubr.bf16.gmra.mrb[44].mxu0 %v1409_v26 }
 0x57b   :  { %2487 = vmatpush3.bf16.msra.mxu0 %v2592_v9  ;;  %2490 = vmatprep.mubr.bf16.mxu0 %v3209_v12 }
 0x57c   :  { %2488 = vmatprep.subr.bf16.mxu0 %v2593_v41 }
 0x57f   :  { %2489 = vmatpush3.bf16.msra.mxu0 %v2593_v41 }
 0x582   :  { %2491 = vmatmul.mubr.bf16.vlgmr.msra.gmra.mrb[32].mxu0 %v3205_v59 }
 0x583   :  { %2494 = vmatprep.mubr.bf16.mxu0 %v3223_v24 }
 0x58a   :  { %2495 = vmatmul.mubr.bf16.gmra.mrb[36].mxu0 %v3220_v2 }
 0x58b   :  { %2498 = vmatprep.mubr.bf16.mxu0 %v3237_v6 }
 0x592   :  { %2499 = vmatmul.mubr.bf16.gmra.mrb[40].mxu0 %v3234_v53 }
 0x593   :  { %2502 = vmatprep.mubr.bf16.mxu0 %v3249_v37 }
 0x59a   :  { %2503 = vmatmul.mubr.bf16.gmra.mrb[44].mxu0 %v3247_v13 }
 0x655   :  { %v2492_v60 = vpop.f32.mrb[32].mxu0 }
 0x656   :  { %v1654_v8 = vpop.f32.mrb[33].mxu0  ;;  %v1726_v59 = vadd.f32 %v2492_v60, %v2003_v7 }
 0x657   :  { %v2493_v63 = vpop.f32.mrb[34].mxu0  ;;  %v1724_v49 = vadd.f32 %v2003_v7, %v1654_v8 }
 0x658   :  { %v1727_v12 = vadd.f32 %v2493_v63, %v2003_v7  ;;  %v1657_v24 = vpop.f32.mrb[35].mxu0 }
 0x659   :  { %v1725_v2 = vadd.f32 %v2003_v7, %v1657_v24 }
 0x65a   :  { %v2076_v42 = vpack.c.bf16 %v1727_v12, %v1726_v59 }
 0x65b   :  { %v2071_v6 = vpack.c.bf16 %v1725_v2, %v1724_v49 }
 0x65c   :  { %2115 = vst [vmem:[%s3364_s6 + $0x8] sm:$0xff] %v2076_v42  }
 0x65d   :  { %2072 = vst [vmem:[%s3364_s6] sm:$0xff] %v2071_v6   ;;  %v2496_v53 = vpop.f32.mrb[36].mxu0 }
 0x65e   :  { %v1670_v13 = vpop.f32.mrb[37].mxu0  ;;  %v1730_v18 = vadd.f32 %v2496_v53, %v2003_v7 }
 0x65f   :  { %v2497_v37 = vpop.f32.mrb[38].mxu0  ;;  %v1728_v5 = vadd.f32 %v2003_v7, %v1670_v13 }
 0x660   :  { %v1731_v35 = vadd.f32 %v2497_v37, %v2003_v7  ;;  %v1673_v3 = vpop.f32.mrb[39].mxu0 }
 0x661   :  { %v1729_v21 = vadd.f32 %v2003_v7, %v1673_v3 }
 0x662   :  { %v2086_v25 = vpack.c.bf16 %v1731_v35, %v1730_v18 }
 0x663   :  { %v2081_v36 = vpack.c.bf16 %v1729_v21, %v1728_v5 }
 0x664   :  { %2117 = vst [vmem:[%s3364_s6 + $0x18] sm:$0xff] %v2086_v25  }
 0x665   :  { %2116 = vst [vmem:[%s3364_s6 + $0x10] sm:$0xff] %v2081_v36   ;;  %v2500_v29 = vpop.f32.mrb[40].mxu0 }
 0x666   :  { %v1686_v22 = vpop.f32.mrb[41].mxu0  ;;  %v1734_v19 = vadd.f32 %v2500_v29, %v2003_v7 }
 0x667   :  { %v2501_v23 = vpop.f32.mrb[42].mxu0  ;;  %v1732_v38 = vadd.f32 %v2003_v7, %v1686_v22 }
 0x668   :  { %v1735_v52 = vadd.f32 %v2501_v23, %v2003_v7  ;;  %v1689_v11 = vpop.f32.mrb[43].mxu0 }
 0x669   :  { %v1733_v16 = vadd.f32 %v2003_v7, %v1689_v11 }
 0x66a   :  { %v2096_v39 = vpack.c.bf16 %v1735_v52, %v1734_v19 }
 0x66b   :  { %v2091_v15 = vpack.c.bf16 %v1733_v16, %v1732_v38 }
 0x66c   :  { %2119 = vst [vmem:[%s3364_s6 + $0x28] sm:$0xff] %v2096_v39  }
 0x66d   :  { %2118 = vst [vmem:[%s3364_s6 + $0x20] sm:$0xff] %v2091_v15   ;;  %v2504_v55 = vpop.f32.mrb[44].mxu0 }
 0x66e   :  { %v1702_v58 = vpop.f32.mrb[45].mxu0  ;;  %v1738_v1 = vadd.f32 %v2504_v55, %v2003_v7 }
 0x66f   :  { %v2505_v0 = vpop.f32.mrb[46].mxu0  ;;  %v1736_v30 = vadd.f32 %v2003_v7, %v1702_v58 }
 0x670   :  { %v1739_v27 = vadd.f32 %v2505_v0, %v2003_v7  ;;  %v1705_v28 = vpop.f32.mrb[47].mxu0 }
 0x671   :  { %v1737_v17 = vadd.f32 %v2003_v7, %v1705_v28 }
 0x672   :  { %v2106_v33 = vpack.c.bf16 %v1739_v27, %v1738_v1 }
 0x673   :  { %v2101_v32 = vpack.c.bf16 %v1737_v17, %v1736_v30 }
 0x674   :  { %2121 = vst [vmem:[%s3364_s6 + $0x38] sm:$0xff] %v2106_v33  }
 0x675   :  { %2120 = vst [vmem:[%s3364_s6 + $0x30] sm:$0xff] %v2101_v32  }

</bundles_post_ra>
